<compile_context>
chip_gen: v5e
topology: v5e:2x2
jax: 0.10.0
libtpu: 0.0.40
codegen_flags: <defaults>
</compile_context>

<pallas_src>
import math
import functools

import jax
import jax.numpy as jnp
from jax.experimental import pallas as pl
from jax.experimental.pallas import tpu as pltpu


def _vmem_limit_bytes():
    """Per-generation scoped-VMEM budget: ~48 MiB on v7x (64 MiB phys), 96 MiB on v5e/v6e."""
    try:
        cap = int(pltpu.get_tpu_info().vmem_capacity_bytes)
    except Exception:
        cap = 128 * 1024 * 1024
    return max(32 * 1024 * 1024, min(96 * 1024 * 1024, (cap * 3) // 4))


# ----------------------------------------------------------------------------
# Kernel 1: flash attention with fused Q/K/V projections (online softmax over
#           kv tiles) + first residual + partial BN1 statistics.
# ----------------------------------------------------------------------------
def _flash_attn_kernel(xq_ref, xkv_ref, wq_ref, wk_ref, wv_ref,
                       h_ref, st_ref, q_scr, m_scr, l_scr, acc_scr):
    kvi = pl.program_id(2)

    @pl.when(kvi == 0)
    def _init():
        # Q projection for this q-tile; 1/sqrt(C) is pre-folded into wq.
        xq = xq_ref[0].astype(jnp.bfloat16)                                # (bq, C)
        q_scr[...] = jnp.dot(xq, wq_ref[...],
                             preferred_element_type=jnp.float32).astype(jnp.bfloat16)
        m_scr[...] = jnp.full(m_scr.shape, -jnp.inf, m_scr.dtype)
        l_scr[...] = jnp.zeros(l_scr.shape, l_scr.dtype)
        acc_scr[...] = jnp.zeros(acc_scr.shape, acc_scr.dtype)

    # K/V projections for this kv tile (recompute: ~C/(2*bq) extra MXU work, saves
    # a full HBM round-trip of k/v).
    xkv = xkv_ref[0].astype(jnp.bfloat16)                                  # (bkv, C)
    k = jnp.dot(xkv, wk_ref[...], preferred_element_type=jnp.float32).astype(jnp.bfloat16)
    v = jnp.dot(xkv, wv_ref[...], preferred_element_type=jnp.float32).astype(jnp.bfloat16)

    # energy[i, j] = <q_i, k_j> / sqrt(C)   (scale folded into wq)
    s = jax.lax.dot_general(q_scr[...], k, (((1,), (1,)), ((), ())),
                            preferred_element_type=jnp.float32)            # (bq, bkv)

    m_prev = m_scr[...]
    m_new = jnp.maximum(m_prev, jnp.max(s, axis=-1, keepdims=True))
    alpha = jnp.exp(m_prev - m_new)
    p = jnp.exp(s - m_new)                                                 # f32 VPU/EUP
    l_scr[...] = alpha * l_scr[...] + jnp.sum(p, axis=-1, keepdims=True)
    acc_scr[...] = alpha * acc_scr[...] + jnp.dot(
        p.astype(jnp.bfloat16), v, preferred_element_type=jnp.float32)
    m_scr[...] = m_new

    @pl.when(kvi == pl.num_programs(2) - 1)
    def _finalize():
        inv_l = pl.reciprocal(l_scr[...], approx=True)       # softmax denom folded here
        h = xq_ref[0] + acc_scr[...] * inv_l                                # (bq, C) f32
        h_ref[0] = h.astype(h_ref.dtype)
        # Partial BN1 statistics for this (b, q-tile): row-sum and row-sum-of-squares.
        s1 = jnp.sum(h, axis=0, keepdims=True)                              # (1, C)
        s2 = jnp.sum(h * h, axis=0, keepdims=True)                          # (1, C)
        st_ref[0, 0] = jnp.concatenate([s1, s2], axis=0)                    # (2, C)


# ----------------------------------------------------------------------------
# Kernel 2: BN1 apply (folded scale/shift) + FFN (1x1 conv -> LeakyReLU -> 1x1 conv)
#           + residual + partial BN2 statistics.
# ----------------------------------------------------------------------------
def _bn_ffn_kernel(h_ref, sc_ref, sh_ref, w1_ref, w2_ref, o_ref, st_ref):
    h1 = h_ref[...] * sc_ref[...] + sh_ref[...]                             # (bm, C) f32
    f = jnp.dot(h1.astype(jnp.bfloat16), w1_ref[...],
                preferred_element_type=jnp.float32)                         # (bm, F)
    f = jnp.where(f >= 0, f, 0.2 * f)                                       # LeakyReLU
    f2 = jnp.dot(f.astype(jnp.bfloat16), w2_ref[...],
                 preferred_element_type=jnp.float32)                        # (bm, C)
    h2 = h1 + f2
    o_ref[...] = h2.astype(o_ref.dtype)
    st_ref[0] = jnp.concatenate([jnp.sum(h2, axis=0, keepdims=True),
                                 jnp.sum(h2 * h2, axis=0, keepdims=True)], axis=0)


# ----------------------------------------------------------------------------
# Wrapper
# ----------------------------------------------------------------------------
def _pick_block(total, candidates):
    for c in candidates:
        if c <= total and total % c == 0:
            return c
    raise ValueError(f"no tile size in {candidates} divides {total}")


@functools.partial(jax.jit, static_argnames=("eps", "block_q", "block_kv", "block_m"))
def point2point_attention(x_ncl, params, *, eps=1e-5,
                          block_q=None, block_kv=None, block_m=None):
    """x_ncl: (B, C, N) float32 (PyTorch Conv1d layout). Returns (B, C, N) float32."""
    B, C, N = x_ncl.shape
    F = params["w1"].shape[0]
    assert N % 128 == 0, "N must be a multiple of 128"
    M = B * N

    vmem_limit = _vmem_limit_bytes()

    # --- tile selection under the VMEM budget -------------------------------------
    if block_q is not None and block_kv is not None:
        bq, bkv = block_q, block_kv
    else:
        bq = _pick_block(N, (512, 256, 128))
        bkv = _pick_block(N, (2048, 1024, 512, 256, 128))

        def _est(a, b):           # rough per-step VMEM footprint of the flash kernel
            io = 2 * (a * C * 4 + b * C * 4) + 2 * a * C * 4   # double-buffered in/out
            scr = a * C * 6 + 8 * a                            # q bf16 + acc f32 + m/l
            tmp = 4 * a * b * 4                                # s/p f32 temporaries
            return io + scr + tmp

        while _est(bq, bkv) > vmem_limit // 2 and bkv > 128:
            bkv //= 2
        while _est(bq, bkv) > vmem_limit // 2 and bq > 128:
            bq //= 2
        if block_q is not None:
            bq = block_q
        if block_kv is not None:
            bkv = block_kv
    bm = block_m or _pick_block(M, (4096, 2048, 1024, 512, 256, 128))

    # Edge layout change NCL -> BNC (channels on the lane dim); done once by XLA.
    x_bnc = jnp.transpose(x_ncl, (0, 2, 1)).astype(jnp.float32)             # (B, N, C)

    # Conv1d weights are (out, in) -> transpose; fold 1/sqrt(C) into Wq.
    inv_sqrt_c = 1.0 / math.sqrt(C)
    wq_t = (params["wq"].T * inv_sqrt_c).astype(jnp.bfloat16)               # (C, C)
    wk_t = params["wk"].T.astype(jnp.bfloat16)                              # (C, C)
    wv_t = params["wv"].T.astype(jnp.bfloat16)                              # (C, C)
    w1_t = params["w1"].T.astype(jnp.bfloat16)                              # (C, F)
    w2_t = params["w2"].T.astype(jnp.bfloat16)                              # (F, C)

    # --- 1) flash attention (fused QKV projections) + first residual + BN1 partials
    n_q = N // bq
    h, st1 = pl.pallas_call(
        _flash_attn_kernel,
        grid=(B, n_q, N // bkv),
        in_specs=[pl.BlockSpec((1, bq, C), lambda b, qi, ki: (b, qi, 0)),   # x (q rows)
                  pl.BlockSpec((1, bkv, C), lambda b, qi, ki: (b, ki, 0)),  # x (kv rows)
                  pl.BlockSpec((C, C), lambda b, qi, ki: (0, 0)),           # wq (scaled)
                  pl.BlockSpec((C, C), lambda b, qi, ki: (0, 0)),           # wk
                  pl.BlockSpec((C, C), lambda b, qi, ki: (0, 0))],          # wv
        out_specs=(pl.BlockSpec((1, bq, C), lambda b, qi, ki: (b, qi, 0)),
                   pl.BlockSpec((1, 1, 2, C), lambda b, qi, ki: (b, qi, 0, 0))),
        out_shape=(jax.ShapeDtypeStruct((B, N, C), jnp.float32),
                   jax.ShapeDtypeStruct((B, n_q, 2, C), jnp.float32)),
        scratch_shapes=[pltpu.VMEM((bq, C), jnp.bfloat16),     # projected q tile
                        pltpu.VMEM((bq, 1), jnp.float32),      # running max
                        pltpu.VMEM((bq, 1), jnp.float32),      # running sum
                        pltpu.VMEM((bq, C), jnp.float32)],     # output accumulator
        compiler_params=pltpu.CompilerParams(
            dimension_semantics=("parallel", "parallel", "arbitrary"),
            vmem_limit_bytes=vmem_limit),
    )(x_bnc, x_bnc, wq_t, wk_t, wv_t)

    # --- BN1: global per-channel stats from the per-tile partial sums (tiny) -------
    inv_m = 1.0 / M
    mean1 = jnp.sum(st1[:, :, 0, :], axis=(0, 1)) * inv_m
    var1 = jnp.maximum(jnp.sum(st1[:, :, 1, :], axis=(0, 1)) * inv_m - mean1 * mean1, 0.0)
    rs1 = jax.lax.rsqrt(var1 + eps)
    scale1 = (params["g1"] * rs1).reshape(1, C).astype(jnp.float32)
    shift1 = (params["b1"] - mean1 * params["g1"] * rs1).reshape(1, C).astype(jnp.float32)

    # --- 2) BN1 apply + FFN + second residual + BN2 partials ------------------------
    h2d = h.reshape(M, C)
    n_m = M // bm
    h2_2d, st2 = pl.pallas_call(
        _bn_ffn_kernel,
        grid=(n_m,),
        in_specs=[pl.BlockSpec((bm, C), lambda i: (i, 0)),
                  pl.BlockSpec((1, C), lambda i: (0, 0)),
                  pl.BlockSpec((1, C), lambda i: (0, 0)),
                  pl.BlockSpec((C, F), lambda i: (0, 0)),
                  pl.BlockSpec((F, C), lambda i: (0, 0))],
        out_specs=(pl.BlockSpec((bm, C), lambda i: (i, 0)),
                   pl.BlockSpec((1, 2, C), lambda i: (i, 0, 0))),
        out_shape=(jax.ShapeDtypeStruct((M, C), jnp.float32),
                   jax.ShapeDtypeStruct((n_m, 2, C), jnp.float32)),
        compiler_params=pltpu.CompilerParams(
            dimension_semantics=("parallel",),
            vmem_limit_bytes=vmem_limit),
    )(h2d, scale1, shift1, w1_t, w2_t)

    # --- BN2: stats from partials; apply fused by XLA with the BNC -> NCL transpose -
    mean2 = jnp.sum(st2[:, 0, :], axis=0) * inv_m
    var2 = jnp.maximum(jnp.sum(st2[:, 1, :], axis=0) * inv_m - mean2 * mean2, 0.0)
    rs2 = jax.lax.rsqrt(var2 + eps)
    scale2 = params["g2"] * rs2
    shift2 = params["b2"] - mean2 * scale2
    out_bnc = h2_2d.reshape(B, N, C) * scale2 + shift2
    return jnp.transpose(out_bnc, (0, 2, 1))                                # (B, C, N)


# ----------------------------------------------------------------------------
# Pure-JAX f32 reference (mirrors the PyTorch module, training-mode BatchNorm)
# ----------------------------------------------------------------------------
def _reference(x_ncl, params, eps=1e-5):
    B, C, N = x_ncl.shape
    x = jnp.transpose(x_ncl, (0, 2, 1)).astype(jnp.float32)                 # (B, N, C)
    q = x @ params["wq"].T
    k = x @ params["wk"].T
    v = x @ params["wv"].T
    energy = jnp.einsum("bic,bjc->bij", q, k) / math.sqrt(C)
    attn = jax.nn.softmax(energy, axis=-1)
    h = x + jnp.einsum("bij,bjc->bic", attn, v)
    m1, v1 = jnp.mean(h, axis=(0, 1)), jnp.var(h, axis=(0, 1))
    h1 = (h - m1) * jax.lax.rsqrt(v1 + eps) * params["g1"] + params["b1"]
    f = h1 @ params["w1"].T
    f = jnp.where(f >= 0, f, 0.2 * f)
    h2 = h1 + f @ params["w2"].T
    m2, v2 = jnp.mean(h2, axis=(0, 1)), jnp.var(h2, axis=(0, 1))
    out = (h2 - m2) * jax.lax.rsqrt(v2 + eps) * params["g2"] + params["b2"]
    return jnp.transpose(out, (0, 2, 1))


if __name__ == "__main__":
    # Module defaults: qkv_channels=64, ff hidden=128.  Small test: B=2, N=256 points.
    B, C, N, F = 2, 64, 256, 128

    key = jax.random.PRNGKey(0)
    kx, kq, kk, kv, k1, k2 = jax.random.split(key, 6)

    x = jax.random.normal(kx, (B, C, N), jnp.float32)
    params = {
        "wq": 0.1 * jax.random.normal(kq, (C, C), jnp.float32),   # Conv1d (out, in)
        "wk": 0.1 * jax.random.normal(kk, (C, C), jnp.float32),
        "wv": 0.1 * jax.random.normal(kv, (C, C), jnp.float32),
        "w1": 0.1 * jax.random.normal(k1, (F, C), jnp.float32),
        "w2": 0.1 * jax.random.normal(k2, (C, F), jnp.float32),
        "g1": jnp.ones((C,), jnp.float32),   # BatchNorm1d defaults (gamma=1, beta=0)
        "b1": jnp.zeros((C,), jnp.float32),
        "g2": jnp.ones((C,), jnp.float32),
        "b2": jnp.zeros((C,), jnp.float32),
    }

    ref = jax.block_until_ready(_reference(x, params))

    # Small explicit blocks: exercises the multi-step online-softmax kv loop and
    # multiple row tiles in the FFN kernel.
    out = jax.block_until_ready(
        point2point_attention(x, params, block_q=128, block_kv=128, block_m=128))
    assert out.shape == (B, C, N) and out.dtype == jnp.float32
    assert bool(jnp.all(jnp.isfinite(out))), "non-finite output (tiled)"
    err = float(jnp.max(jnp.abs(out - ref)))
    # bf16 MXU operands (f32 accumulation) + approx reciprocal => loose tolerance
    # vs the f32 reference; outputs are unit-scale after the final BatchNorm.
    assert err < 0.25, f"kernel/reference mismatch (tiled): max abs err {err}"

    # Default auto-selected tiles (single kv step at this N).
    out2 = jax.block_until_ready(point2point_attention(x, params))
    assert bool(jnp.all(jnp.isfinite(out2))), "non-finite output (auto)"
    err2 = float(jnp.max(jnp.abs(out2 - ref)))
    assert err2 < 0.25, f"kernel/reference mismatch (auto): max abs err {err2}"

    print("KERNEL_OK")
</pallas_src>

<mosaic_0001>
module attributes {stable_mosaic.version = 11 : i64} {
  func.func @_flash_attn_kernel(%arg0: i32, %arg1: i32, %arg2: i32, %arg3: memref<1x128x64xf32, #tpu.memory_space<vmem>>, %arg4: memref<1x128x64xf32, #tpu.memory_space<vmem>>, %arg5: memref<64x64xbf16, #tpu.memory_space<vmem>>, %arg6: memref<64x64xbf16, #tpu.memory_space<vmem>>, %arg7: memref<64x64xbf16, #tpu.memory_space<vmem>>, %arg8: memref<1x128x64xf32, #tpu.memory_space<vmem>>, %arg9: memref<1x1x2x64xf32, #tpu.memory_space<vmem>>, %arg10: memref<128x64xbf16, #tpu.memory_space<vmem>>, %arg11: memref<128x1xf32, #tpu.memory_space<vmem>>, %arg12: memref<128x1xf32, #tpu.memory_space<vmem>>, %arg13: memref<128x64xf32, #tpu.memory_space<vmem>>) attributes {dimension_semantics = [#tpu.dimension_semantics<parallel>, #tpu.dimension_semantics<parallel>, #tpu.dimension_semantics<arbitrary>], iteration_bounds = array<i64: 2, 2, 2>, scalar_prefetch = 0 : i64, scratch_operands = 4 : i64, tpu.core_type = #tpu.core_type<tc>, window_params = [{transform_indices = @transform_0, window_bounds = array<i64: 1, 128, 64>}, {transform_indices = @transform_1, window_bounds = array<i64: 1, 128, 64>}, {pipeline_mode = #tpu.pipeline_mode<synchronous>, transform_indices = @transform_2, window_bounds = array<i64: 64, 64>}, {pipeline_mode = #tpu.pipeline_mode<synchronous>, transform_indices = @transform_3, window_bounds = array<i64: 64, 64>}, {pipeline_mode = #tpu.pipeline_mode<synchronous>, transform_indices = @transform_4, window_bounds = array<i64: 64, 64>}, {transform_indices = @transform_5, window_bounds = array<i64: 1, 128, 64>}, {transform_indices = @transform_6, window_bounds = array<i64: 1, 1, 2, 64>}]} {
    %c0_i32 = arith.constant 0 : i32
    %0 = arith.cmpi eq, %arg2, %c0_i32 : i32
    %1 = arith.extui %0 : i1 to i32
    %c0_i32_0 = arith.constant 0 : i32
    %2 = arith.cmpi ne, %1, %c0_i32_0 : i32
    scf.if %2 {
      %c0_27 = arith.constant 0 : index
      %c0_28 = arith.constant 0 : index
      %c0_29 = arith.constant 0 : index
      %40 = vector.load %arg3[%c0_27, %c0_28, %c0_29] : memref<1x128x64xf32, #tpu.memory_space<vmem>>, vector<1x128x64xf32>
      %41 = vector.shape_cast %40 : vector<1x128x64xf32> to vector<128x64xf32>
      %42 = arith.truncf %41 : vector<128x64xf32> to vector<128x64xbf16>
      %c0_30 = arith.constant 0 : index
      %c0_31 = arith.constant 0 : index
      %43 = vector.load %arg5[%c0_30, %c0_31] : memref<64x64xbf16, #tpu.memory_space<vmem>>, vector<64x64xbf16>
      %cst_32 = arith.constant dense<0.000000e+00> : vector<128x64xf32>
      %44 = tpu.matmul %42, %43, %cst_32 {dimension_numbers = #tpu.dot_dimension_numbers<[1], [0], [0], [1], [0, 0, 1, 1], [], []>} : vector<128x64xbf16>, vector<64x64xbf16>, vector<128x64xf32> -> vector<128x64xf32>
      %45 = arith.truncf %44 : vector<128x64xf32> to vector<128x64xbf16>
      %c0_33 = arith.constant 0 : index
      %c0_34 = arith.constant 0 : index
      %46 = vector.load %arg10[%c0_33, %c0_34] : memref<128x64xbf16, #tpu.memory_space<vmem>>, vector<128x64xbf16>
      tpu.vector_store %arg10[%c0_33, %c0_34], %45 {strides = array<i32>} : memref<128x64xbf16, #tpu.memory_space<vmem>>, vector<128x64xbf16>,
      %cst_35 = arith.constant 0xFF800000 : f32
      %47 = vector.broadcast %cst_35 : f32 to vector<128x1xf32>
      %c0_36 = arith.constant 0 : index
      %c0_37 = arith.constant 0 : index
      %48 = vector.load %arg11[%c0_36, %c0_37] : memref<128x1xf32, #tpu.memory_space<vmem>>, vector<128x1xf32>
      tpu.vector_store %arg11[%c0_36, %c0_37], %47 {strides = array<i32>} : memref<128x1xf32, #tpu.memory_space<vmem>>, vector<128x1xf32>,
      %cst_38 = arith.constant 0.000000e+00 : f32
      %49 = vector.broadcast %cst_38 : f32 to vector<128x1xf32>
      %c0_39 = arith.constant 0 : index
      %c0_40 = arith.constant 0 : index
      %50 = vector.load %arg12[%c0_39, %c0_40] : memref<128x1xf32, #tpu.memory_space<vmem>>, vector<128x1xf32>
      tpu.vector_store %arg12[%c0_39, %c0_40], %49 {strides = array<i32>} : memref<128x1xf32, #tpu.memory_space<vmem>>, vector<128x1xf32>,
      %cst_41 = arith.constant 0.000000e+00 : f32
      %51 = vector.broadcast %cst_41 : f32 to vector<128x64xf32>
      %c0_42 = arith.constant 0 : index
      %c0_43 = arith.constant 0 : index
      %52 = vector.load %arg13[%c0_42, %c0_43] : memref<128x64xf32, #tpu.memory_space<vmem>>, vector<128x64xf32>
      tpu.vector_store %arg13[%c0_42, %c0_43], %51 {strides = array<i32>} : memref<128x64xf32, #tpu.memory_space<vmem>>, vector<128x64xf32>,
    } else {
    }
    %c0 = arith.constant 0 : index
    %c0_1 = arith.constant 0 : index
    %c0_2 = arith.constant 0 : index
    %3 = vector.load %arg4[%c0, %c0_1, %c0_2] : memref<1x128x64xf32, #tpu.memory_space<vmem>>, vector<1x128x64xf32>
    %4 = vector.shape_cast %3 : vector<1x128x64xf32> to vector<128x64xf32>
    %5 = arith.truncf %4 : vector<128x64xf32> to vector<128x64xbf16>
    %c0_3 = arith.constant 0 : index
    %c0_4 = arith.constant 0 : index
    %6 = vector.load %arg6[%c0_3, %c0_4] : memref<64x64xbf16, #tpu.memory_space<vmem>>, vector<64x64xbf16>
    %cst = arith.constant dense<0.000000e+00> : vector<128x64xf32>
    %7 = tpu.matmul %5, %6, %cst {dimension_numbers = #tpu.dot_dimension_numbers<[1], [0], [0], [1], [0, 0, 1, 1], [], []>} : vector<128x64xbf16>, vector<64x64xbf16>, vector<128x64xf32> -> vector<128x64xf32>
    %8 = arith.truncf %7 : vector<128x64xf32> to vector<128x64xbf16>
    %c0_5 = arith.constant 0 : index
    %c0_6 = arith.constant 0 : index
    %9 = vector.load %arg7[%c0_5, %c0_6] : memref<64x64xbf16, #tpu.memory_space<vmem>>, vector<64x64xbf16>
    %cst_7 = arith.constant dense<0.000000e+00> : vector<128x64xf32>
    %10 = tpu.matmul %5, %9, %cst_7 {dimension_numbers = #tpu.dot_dimension_numbers<[1], [0], [0], [1], [0, 0, 1, 1], [], []>} : vector<128x64xbf16>, vector<64x64xbf16>, vector<128x64xf32> -> vector<128x64xf32>
    %11 = arith.truncf %10 : vector<128x64xf32> to vector<128x64xbf16>
    %c0_8 = arith.constant 0 : index
    %c0_9 = arith.constant 0 : index
    %12 = vector.load %arg10[%c0_8, %c0_9] : memref<128x64xbf16, #tpu.memory_space<vmem>>, vector<128x64xbf16>
    %cst_10 = arith.constant dense<0.000000e+00> : vector<128x128xf32>
    %13 = tpu.matmul %12, %8, %cst_10 {dimension_numbers = #tpu.dot_dimension_numbers<[1], [1], [0], [0], [0, 0, 1, 0], [], []>} : vector<128x64xbf16>, vector<128x64xbf16>, vector<128x128xf32> -> vector<128x128xf32>
    %c0_11 = arith.constant 0 : index
    %c0_12 = arith.constant 0 : index
    %14 = vector.load %arg11[%c0_11, %c0_12] : memref<128x1xf32, #tpu.memory_space<vmem>>, vector<128x1xf32>
    %cst_13 = arith.constant dense<0xFF800000> : vector<128xf32>
    %15 = vector.multi_reduction <maximumf>, %13, %cst_13 [1] : vector<128x128xf32> to vector<128xf32>
    %16 = vector.shape_cast %15 : vector<128xf32> to vector<128x1xf32>
    %17 = arith.maximumf %14, %16 : vector<128x1xf32>
    %18 = arith.subf %14, %17 : vector<128x1xf32>
    %19 = math.exp %18 : vector<128x1xf32>
    %20 = vector.broadcast %17 : vector<128x1xf32> to vector<128x128xf32>
    %21 = arith.subf %13, %20 : vector<128x128xf32>
    %22 = math.exp %21 : vector<128x128xf32>
    %c0_14 = arith.constant 0 : index
    %c0_15 = arith.constant 0 : index
    %23 = vector.load %arg12[%c0_14, %c0_15] : memref<128x1xf32, #tpu.memory_space<vmem>>, vector<128x1xf32>
    %24 = arith.mulf %19, %23 : vector<128x1xf32>
    %cst_16 = arith.constant dense<0.000000e+00> : vector<128xf32>
    %25 = vector.multi_reduction <add>, %22, %cst_16 [1] : vector<128x128xf32> to vector<128xf32>
    %26 = vector.shape_cast %25 : vector<128xf32> to vector<128x1xf32>
    %27 = arith.addf %24, %26 : vector<128x1xf32>
    %c0_17 = arith.constant 0 : index
    %c0_18 = arith.constant 0 : index
    %28 = vector.load %arg12[%c0_17, %c0_18] : memref<128x1xf32, #tpu.memory_space<vmem>>, vector<128x1xf32>
    tpu.vector_store %arg12[%c0_17, %c0_18], %27 {strides = array<i32>} : memref<128x1xf32, #tpu.memory_space<vmem>>, vector<128x1xf32>,
    %c0_19 = arith.constant 0 : index
    %c0_20 = arith.constant 0 : index
    %29 = vector.load %arg13[%c0_19, %c0_20] : memref<128x64xf32, #tpu.memory_space<vmem>>, vector<128x64xf32>
    %30 = vector.broadcast %19 : vector<128x1xf32> to vector<128x64xf32>
    %31 = arith.mulf %30, %29 : vector<128x64xf32>
    %32 = arith.truncf %22 : vector<128x128xf32> to vector<128x128xbf16>
    %cst_21 = arith.constant dense<0.000000e+00> : vector<128x64xf32>
    %33 = tpu.matmul %32, %11, %cst_21 {dimension_numbers = #tpu.dot_dimension_numbers<[1], [0], [0], [1], [0, 0, 1, 1], [], []>} : vector<128x128xbf16>, vector<128x64xbf16>, vector<128x64xf32> -> vector<128x64xf32>
    %34 = arith.addf %31, %33 : vector<128x64xf32>
    %c0_22 = arith.constant 0 : index
    %c0_23 = arith.constant 0 : index
    %35 = vector.load %arg13[%c0_22, %c0_23] : memref<128x64xf32, #tpu.memory_space<vmem>>, vector<128x64xf32>
    tpu.vector_store %arg13[%c0_22, %c0_23], %34 {strides = array<i32>} : memref<128x64xf32, #tpu.memory_space<vmem>>, vector<128x64xf32>,
    %c0_24 = arith.constant 0 : index
    %c0_25 = arith.constant 0 : index
    %36 = vector.load %arg11[%c0_24, %c0_25] : memref<128x1xf32, #tpu.memory_space<vmem>>, vector<128x1xf32>
    tpu.vector_store %arg11[%c0_24, %c0_25], %17 {strides = array<i32>} : memref<128x1xf32, #tpu.memory_space<vmem>>, vector<128x1xf32>,
    %c1_i32 = arith.constant 1 : i32
    %37 = arith.cmpi eq, %arg2, %c1_i32 : i32
    %38 = arith.extui %37 : i1 to i32
    %c0_i32_26 = arith.constant 0 : i32
    %39 = arith.cmpi ne, %38, %c0_i32_26 : i32
    scf.if %39 {
      %c0_27 = arith.constant 0 : index
      %c0_28 = arith.constant 0 : index
      %40 = vector.load %arg12[%c0_27, %c0_28] : memref<128x1xf32, #tpu.memory_space<vmem>>, vector<128x1xf32>
      %41 = tpu.reciprocal %40 {approx = true} : vector<128x1xf32> -> vector<128x1xf32>
      %c0_29 = arith.constant 0 : index
      %c0_30 = arith.constant 0 : index
      %c0_31 = arith.constant 0 : index
      %42 = vector.load %arg3[%c0_29, %c0_30, %c0_31] : memref<1x128x64xf32, #tpu.memory_space<vmem>>, vector<1x128x64xf32>
      %43 = vector.shape_cast %42 : vector<1x128x64xf32> to vector<128x64xf32>
      %c0_32 = arith.constant 0 : index
      %c0_33 = arith.constant 0 : index
      %44 = vector.load %arg13[%c0_32, %c0_33] : memref<128x64xf32, #tpu.memory_space<vmem>>, vector<128x64xf32>
      %45 = vector.broadcast %41 : vector<128x1xf32> to vector<128x64xf32>
      %46 = arith.mulf %44, %45 : vector<128x64xf32>
      %47 = arith.addf %43, %46 : vector<128x64xf32>
      %c0_34 = arith.constant 0 : index
      %c0_35 = arith.constant 0 : index
      %c0_36 = arith.constant 0 : index
      %48 = vector.load %arg8[%c0_34, %c0_35, %c0_36] : memref<1x128x64xf32, #tpu.memory_space<vmem>>, vector<1x128x64xf32>
      %49 = vector.shape_cast %48 : vector<1x128x64xf32> to vector<128x64xf32>
      %50 = vector.shape_cast %47 : vector<128x64xf32> to vector<1x128x64xf32>
      tpu.vector_store %arg8[%c0_34, %c0_35, %c0_36], %50 {strides = array<i32>} : memref<1x128x64xf32, #tpu.memory_space<vmem>>, vector<1x128x64xf32>,
      %cst_37 = arith.constant dense<0.000000e+00> : vector<64xf32>
      %51 = vector.multi_reduction <add>, %47, %cst_37 [0] : vector<128x64xf32> to vector<64xf32>
      %52 = vector.shape_cast %51 : vector<64xf32> to vector<1x64xf32>
      %53 = arith.mulf %47, %47 : vector<128x64xf32>
      %cst_38 = arith.constant dense<0.000000e+00> : vector<64xf32>
      %54 = vector.multi_reduction <add>, %53, %cst_38 [0] : vector<128x64xf32> to vector<64xf32>
      %55 = vector.shape_cast %54 : vector<64xf32> to vector<1x64xf32>
      %56 = tpu.concatenate %52, %55 in 0 : vector<1x64xf32>, vector<1x64xf32> -> vector<2x64xf32>
      %c0_39 = arith.constant 0 : index
      %c0_40 = arith.constant 0 : index
      %c0_41 = arith.constant 0 : index
      %c0_42 = arith.constant 0 : index
      %57 = vector.load %arg9[%c0_39, %c0_40, %c0_41, %c0_42] : memref<1x1x2x64xf32, #tpu.memory_space<vmem>>, vector<1x1x2x64xf32>
      %58 = vector.shape_cast %57 : vector<1x1x2x64xf32> to vector<2x64xf32>
      %59 = vector.shape_cast %56 : vector<2x64xf32> to vector<1x1x2x64xf32>
      tpu.vector_store %arg9[%c0_39, %c0_40, %c0_41, %c0_42], %59 {strides = array<i32>} : memref<1x1x2x64xf32, #tpu.memory_space<vmem>>, vector<1x1x2x64xf32>,
    } else {
    }
    return
  }
  func.func @transform_0(%arg0: i32, %arg1: i32, %arg2: i32) -> (i32, i32, i32) {
    %c0_i32 = arith.constant 0 : i32
    %c0_i32_0 = arith.constant 0 : i32
    return %arg0, %arg1, %c0_i32 : i32, i32, i32
  }
  func.func @transform_1(%arg0: i32, %arg1: i32, %arg2: i32) -> (i32, i32, i32) {
    %c0_i32 = arith.constant 0 : i32
    %c0_i32_0 = arith.constant 0 : i32
    return %arg0, %arg2, %c0_i32 : i32, i32, i32
  }
  func.func @transform_2(%arg0: i32, %arg1: i32, %arg2: i32) -> (i32, i32) {
    %c0_i32 = arith.constant 0 : i32
    %c0_i32_0 = arith.constant 0 : i32
    %c0_i32_1 = arith.constant 0 : i32
    return %c0_i32, %c0_i32_0 : i32, i32
  }
  func.func @transform_3(%arg0: i32, %arg1: i32, %arg2: i32) -> (i32, i32) {
    %c0_i32 = arith.constant 0 : i32
    %c0_i32_0 = arith.constant 0 : i32
    %c0_i32_1 = arith.constant 0 : i32
    return %c0_i32, %c0_i32_0 : i32, i32
  }
  func.func @transform_4(%arg0: i32, %arg1: i32, %arg2: i32) -> (i32, i32) {
    %c0_i32 = arith.constant 0 : i32
    %c0_i32_0 = arith.constant 0 : i32
    %c0_i32_1 = arith.constant 0 : i32
    return %c0_i32, %c0_i32_0 : i32, i32
  }
  func.func @transform_5(%arg0: i32, %arg1: i32, %arg2: i32) -> (i32, i32, i32) {
    %c0_i32 = arith.constant 0 : i32
    %c0_i32_0 = arith.constant 0 : i32
    return %arg0, %arg1, %c0_i32 : i32, i32, i32
  }
  func.func @transform_6(%arg0: i32, %arg1: i32, %arg2: i32) -> (i32, i32, i32, i32) {
    %c0_i32 = arith.constant 0 : i32
    %c0_i32_0 = arith.constant 0 : i32
    %c0_i32_1 = arith.constant 0 : i32
    return %arg0, %arg1, %c0_i32, %c0_i32_0 : i32, i32, i32, i32
  }
}

module attributes {stable_mosaic.version = 11 : i64} {
  func.func @_bn_ffn_kernel(%arg0: i32, %arg1: memref<128x64xf32, #tpu.memory_space<vmem>>, %arg2: memref<1x64xf32, #tpu.memory_space<vmem>>, %arg3: memref<1x64xf32, #tpu.memory_space<vmem>>, %arg4: memref<64x128xbf16, #tpu.memory_space<vmem>>, %arg5: memref<128x64xbf16, #tpu.memory_space<vmem>>, %arg6: memref<128x64xf32, #tpu.memory_space<vmem>>, %arg7: memref<1x2x64xf32, #tpu.memory_space<vmem>>) attributes {dimension_semantics = [#tpu.dimension_semantics<parallel>], iteration_bounds = array<i64: 4>, scalar_prefetch = 0 : i64, scratch_operands = 0 : i64, tpu.core_type = #tpu.core_type<tc>, window_params = [{transform_indices = @transform_0, window_bounds = array<i64: 128, 64>}, {pipeline_mode = #tpu.pipeline_mode<synchronous>, transform_indices = @transform_1, window_bounds = array<i64: 1, 64>}, {pipeline_mode = #tpu.pipeline_mode<synchronous>, transform_indices = @transform_2, window_bounds = array<i64: 1, 64>}, {pipeline_mode = #tpu.pipeline_mode<synchronous>, transform_indices = @transform_3, window_bounds = array<i64: 64, 128>}, {pipeline_mode = #tpu.pipeline_mode<synchronous>, transform_indices = @transform_4, window_bounds = array<i64: 128, 64>}, {transform_indices = @transform_5, window_bounds = array<i64: 128, 64>}, {transform_indices = @transform_6, window_bounds = array<i64: 1, 2, 64>}]} {
    %c0 = arith.constant 0 : index
    %c0_0 = arith.constant 0 : index
    %0 = vector.load %arg1[%c0, %c0_0] : memref<128x64xf32, #tpu.memory_space<vmem>>, vector<128x64xf32>
    %c0_1 = arith.constant 0 : index
    %c0_2 = arith.constant 0 : index
    %1 = vector.load %arg2[%c0_1, %c0_2] : memref<1x64xf32, #tpu.memory_space<vmem>>, vector<1x64xf32>
    %2 = vector.broadcast %1 : vector<1x64xf32> to vector<128x64xf32>
    %3 = arith.mulf %0, %2 : vector<128x64xf32>
    %c0_3 = arith.constant 0 : index
    %c0_4 = arith.constant 0 : index
    %4 = vector.load %arg3[%c0_3, %c0_4] : memref<1x64xf32, #tpu.memory_space<vmem>>, vector<1x64xf32>
    %5 = vector.broadcast %4 : vector<1x64xf32> to vector<128x64xf32>
    %6 = arith.addf %3, %5 : vector<128x64xf32>
    %7 = arith.truncf %6 : vector<128x64xf32> to vector<128x64xbf16>
    %c0_5 = arith.constant 0 : index
    %c0_6 = arith.constant 0 : index
    %8 = vector.load %arg4[%c0_5, %c0_6] : memref<64x128xbf16, #tpu.memory_space<vmem>>, vector<64x128xbf16>
    %cst = arith.constant dense<0.000000e+00> : vector<128x128xf32>
    %9 = tpu.matmul %7, %8, %cst {dimension_numbers = #tpu.dot_dimension_numbers<[1], [0], [0], [1], [0, 0, 1, 1], [], []>} : vector<128x64xbf16>, vector<64x128xbf16>, vector<128x128xf32> -> vector<128x128xf32>
    %cst_7 = arith.constant 0.000000e+00 : f32
    %10 = vector.broadcast %cst_7 : f32 to vector<128x128xf32>
    %11 = arith.cmpf oge, %9, %10 : vector<128x128xf32>
    %cst_8 = arith.constant 2.000000e-01 : f32
    %12 = vector.broadcast %cst_8 : f32 to vector<128x128xf32>
    %13 = arith.mulf %12, %9 : vector<128x128xf32>
    %14 = arith.select %11, %9, %13 : vector<128x128xi1>, vector<128x128xf32>
    %15 = arith.truncf %14 : vector<128x128xf32> to vector<128x128xbf16>
    %c0_9 = arith.constant 0 : index
    %c0_10 = arith.constant 0 : index
    %16 = vector.load %arg5[%c0_9, %c0_10] : memref<128x64xbf16, #tpu.memory_space<vmem>>, vector<128x64xbf16>
    %cst_11 = arith.constant dense<0.000000e+00> : vector<128x64xf32>
    %17 = tpu.matmul %15, %16, %cst_11 {dimension_numbers = #tpu.dot_dimension_numbers<[1], [0], [0], [1], [0, 0, 1, 1], [], []>} : vector<128x128xbf16>, vector<128x64xbf16>, vector<128x64xf32> -> vector<128x64xf32>
    %18 = arith.addf %6, %17 : vector<128x64xf32>
    %c0_12 = arith.constant 0 : index
    %c0_13 = arith.constant 0 : index
    %19 = vector.load %arg6[%c0_12, %c0_13] : memref<128x64xf32, #tpu.memory_space<vmem>>, vector<128x64xf32>
    tpu.vector_store %arg6[%c0_12, %c0_13], %18 {strides = array<i32>} : memref<128x64xf32, #tpu.memory_space<vmem>>, vector<128x64xf32>,
    %cst_14 = arith.constant dense<0.000000e+00> : vector<64xf32>
    %20 = vector.multi_reduction <add>, %18, %cst_14 [0] : vector<128x64xf32> to vector<64xf32>
    %21 = vector.shape_cast %20 : vector<64xf32> to vector<1x64xf32>
    %22 = arith.mulf %18, %18 : vector<128x64xf32>
    %cst_15 = arith.constant dense<0.000000e+00> : vector<64xf32>
    %23 = vector.multi_reduction <add>, %22, %cst_15 [0] : vector<128x64xf32> to vector<64xf32>
    %24 = vector.shape_cast %23 : vector<64xf32> to vector<1x64xf32>
    %25 = tpu.concatenate %21, %24 in 0 : vector<1x64xf32>, vector<1x64xf32> -> vector<2x64xf32>
    %c0_16 = arith.constant 0 : index
    %c0_17 = arith.constant 0 : index
    %c0_18 = arith.constant 0 : index
    %26 = vector.load %arg7[%c0_16, %c0_17, %c0_18] : memref<1x2x64xf32, #tpu.memory_space<vmem>>, vector<1x2x64xf32>
    %27 = vector.shape_cast %26 : vector<1x2x64xf32> to vector<2x64xf32>
    %28 = vector.shape_cast %25 : vector<2x64xf32> to vector<1x2x64xf32>
    tpu.vector_store %arg7[%c0_16, %c0_17, %c0_18], %28 {strides = array<i32>} : memref<1x2x64xf32, #tpu.memory_space<vmem>>, vector<1x2x64xf32>,
    return
  }
  func.func @transform_0(%arg0: i32) -> (i32, i32) {
    %c0_i32 = arith.constant 0 : i32
    %c0_i32_0 = arith.constant 0 : i32
    return %arg0, %c0_i32 : i32, i32
  }
  func.func @transform_1(%arg0: i32) -> (i32, i32) {
    %c0_i32 = arith.constant 0 : i32
    %c0_i32_0 = arith.constant 0 : i32
    %c0_i32_1 = arith.constant 0 : i32
    return %c0_i32, %c0_i32_0 : i32, i32
  }
  func.func @transform_2(%arg0: i32) -> (i32, i32) {
    %c0_i32 = arith.constant 0 : i32
    %c0_i32_0 = arith.constant 0 : i32
    %c0_i32_1 = arith.constant 0 : i32
    return %c0_i32, %c0_i32_0 : i32, i32
  }
  func.func @transform_3(%arg0: i32) -> (i32, i32) {
    %c0_i32 = arith.constant 0 : i32
    %c0_i32_0 = arith.constant 0 : i32
    %c0_i32_1 = arith.constant 0 : i32
    return %c0_i32, %c0_i32_0 : i32, i32
  }
  func.func @transform_4(%arg0: i32) -> (i32, i32) {
    %c0_i32 = arith.constant 0 : i32
    %c0_i32_0 = arith.constant 0 : i32
    %c0_i32_1 = arith.constant 0 : i32
    return %c0_i32, %c0_i32_0 : i32, i32
  }
  func.func @transform_5(%arg0: i32) -> (i32, i32) {
    %c0_i32 = arith.constant 0 : i32
    %c0_i32_0 = arith.constant 0 : i32
    return %arg0, %c0_i32 : i32, i32
  }
  func.func @transform_6(%arg0: i32) -> (i32, i32, i32) {
    %c0_i32 = arith.constant 0 : i32
    %c0_i32_0 = arith.constant 0 : i32
    %c0_i32_1 = arith.constant 0 : i32
    return %arg0, %c0_i32, %c0_i32_0 : i32, i32, i32
  }
}

</mosaic_0001>

<bundles_post_ra>
// kernel: point2point_attention.3
= control target key start
LH: loop header
LB: loop body
LE: loop exit
PB: predicated region body
PF: predicated region fallthrough
CT: control target
= control target key end

     0   :  { %s964_s21 = smov 0   ;;  %s1230_s0 = inlined_call_operand.vmem [shape: f32[512,64], index: 0, kind: input, shape index: {}]   ;;  %s1231_s1 = inlined_call_operand.vmem [shape: f32[1,64], index: 1, kind: input, shape index: {}]   ;;  %s1232_s2 = inlined_call_operand.vmem [shape: f32[1,64], index: 2, kind: input, shape index: {}]   ;;  %s1233_s3 = inlined_call_operand.vmem [shape: bf16[64,128], index: 3, kind: input, shape index: {}]   ;;  %s1234_s4 = inlined_call_operand.vmem [shape: bf16[128,64], index: 4, kind: input, shape index: {}]   ;;  %s1235_s5 = inlined_call_operand.vmem [shape: f32[512,64], index: 5, kind: output, shape index: {0}]   ;;  %s1236_s6 = inlined_call_operand.vmem [shape: f32[4,2,64], index: 6, kind: output, shape index: {1}]  }
   0x1 LB: > { %s970_s22 = sadd.s32 4294967295, %s927_s21   ;;  %p823_p0 = scmp.ge.s32.totalorder %s927_s21, 1  ;;  %s927_s21 = sphi %s964_s21, %s17_s21  }
   0x2   : > { %p216_p1 = scmp.lt.s32.totalorder %s927_s21, 5 }
   0x4   : > { %p217_p2 = pnand %p823_p0, %p216_p1 }
   0x5   : > { %s824_s25 = sshll.u32 (!%p217_p2), %s970_s22, 4  ;;  %p262_p4 = scmp.lt.s32.totalorder (!%p217_p2), %s970_s22, 3 }
   0x6   : > { %220 = sbr.rel (%p217_p2) target bundleno = 439 (0x1b7), region = 40  ;;  %p251_p3 = scmp.lt.s32.totalorder (!%p217_p2), %s824_s25, 63 }
   0xb   : > { %v890_v0 = vld [vmem:[%s1233_s3 + $0x18] sm:$0xff]  ;;  %v889_v1 = vld [vmem:[%s1233_s3 + $0x10] sm:$0xff]  ;;  %s1238_s25 = smov (!%p251_p3, %s824_s25), 63  ;;  %v986_v2 = vld [vmem:[%s1231_s1] ss:$0 sm:$0xff]  ;;  %vm363_vm0 = vcmask 523264  }
   0xc   : > { %392 = vmatpush.bf16.msra.mxu0 %v890_v0  ;;  %899 = vmatpush.bf16.msra.mxu3 %v890_v0  ;;  %s825_s30 = sshll.u32 %s1238_s25, 3  ;;  %v888_v3 = vld [vmem:[%s1233_s3 + $0x8] sm:$0xff]  ;;  %v1002_v4 = vld [vmem:[%s1232_s2] ss:$0 sm:$0xff]  ;;  %v898_v47 = vld [vmem:[%s1234_s4 + $0x38] sm:$0xff]  ;;  %s1240_s22 = smov (!%p262_p4, %s970_s22), 3 }
   0xd   : > { %s997_s11 = scalar_lea.vmem %s1230_s0, %s825_s30  ;;  %v887_v9 = vld [vmem:[%s1233_s3] sm:$0xff]  ;;  %557 = vmatpush.bf16.msra.mxu1 %v898_v47  ;;  %v897_v51 = vld [vmem:[%s1234_s4 + $0x30] sm:$0xff]  ;;  %903 = vmatpush.bf16.msra.mxu2 %v898_v47  ;;  %v896_v56 = vld [vmem:[%s1234_s4 + $0x28] sm:$0xff]  ;;  %s1140_s14 = scalar_lea.vmem %s1235_s5, %s825_s30 }
   0xe   : > { %v267_v5 = vld [vmem:[%s997_s11] sm:$0xff]  ;;  %v268_v6 = vld [vmem:[%s997_s11 + $0x8] sm:$0xff]  ;;  %v269_v13 = vld [vmem:[%s997_s11 + $0x10] sm:$0xff]  ;;  %s828_s25 = sshll.u32 %s1240_s22, 1 }
   0xf   : > { %v287_v7 = vmul.f32 %v986_v2, %v267_v5  ;;  %v288_v8 = vmul.f32 %v986_v2, %v268_v6  ;;  %v270_v14 = vld [vmem:[%s997_s11 + $0x18] sm:$0xff]  ;;  %v289_v15 = vmul.f32 %v986_v2, %v269_v13  ;;  %v275_v20 = vld [vmem:[%s997_s11 + $0x40] sm:$0xff]  ;;  %v276_v21 = vld [vmem:[%s997_s11 + $0x48] sm:$0xff]  ;;  %s265_s16 = scalar_lea.vmem %s1236_s6, %s828_s25 }
  0x10   : > { %393 = vmatpush.bf16.msra.mxu0 %v889_v1  ;;  %900 = vmatpush.bf16.msra.mxu3 %v889_v1  ;;  %v290_v16 = vmul.f32 %v986_v2, %v270_v14  ;;  %v271_v22 = vld [vmem:[%s997_s11 + $0x20] sm:$0xff]  ;;  %v272_v23 = vld [vmem:[%s997_s11 + $0x28] sm:$0xff]  ;;  %v295_v24 = vmul.f32 %v986_v2, %v275_v20  ;;  %v296_v25 = vmul.f32 %v986_v2, %v276_v21  ;;  %v277_v32 = vld [vmem:[%s997_s11 + $0x50] sm:$0xff] }
  0x11   : > { %v1012_v10 = vadd.f32 %v1002_v4, %v287_v7  ;;  %v1015_v11 = vadd.f32 %v1002_v4, %v288_v8  ;;  %v1025_v17 = vadd.f32 %v1002_v4, %v289_v15  ;;  %v291_v28 = vmul.f32 %v986_v2, %v271_v22  ;;  %v278_v33 = vld [vmem:[%s997_s11 + $0x58] sm:$0xff]  ;;  %v273_v40 = vld [vmem:[%s997_s11 + $0x30] sm:$0xff]  ;;  %v279_v42 = vld [vmem:[%s997_s11 + $0x60] sm:$0xff]  ;;  %558 = vmatpush.bf16.msra.mxu1 %v897_v51 }
  0x12   : > { %v1028_v18 = vadd.f32 %v1002_v4, %v290_v16  ;;  %v1040_v26 = vadd.f32 %v1002_v4, %v295_v24  ;;  %v1043_v27 = vadd.f32 %v1002_v4, %v296_v25  ;;  %v292_v29 = vmul.f32 %v986_v2, %v272_v23  ;;  %v274_v41 = vld [vmem:[%s997_s11 + $0x38] sm:$0xff]  ;;  %v281_v43 = vld [vmem:[%s997_s11 + $0x70] sm:$0xff]  ;;  %v280_v44 = vld [vmem:[%s997_s11 + $0x68] sm:$0xff]  ;;  %904 = vmatpush.bf16.msra.mxu2 %v897_v51 }
  0x13   : > { %v323_v12 = vpack.c.bf16 %v1015_v11, %v1012_v10  ;;  %v1048_v30 = vadd.f32 %v1002_v4, %v291_v28  ;;  %v297_v34 = vmul.f32 %v986_v2, %v277_v32  ;;  %v298_v35 = vmul.f32 %v986_v2, %v278_v33  ;;  %v282_v45 = vld [vmem:[%s997_s11 + $0x78] sm:$0xff]  ;;  %v895_v61 = vld [vmem:[%s1234_s4 + $0x20] sm:$0xff] }
  0x14   : > { %394 = vmatpush.bf16.msra.mxu0 %v888_v3  ;;  %901 = vmatpush.bf16.msra.mxu3 %v888_v3  ;;  %v324_v19 = vpack.c.bf16 %v1028_v18, %v1025_v17  ;;  %v1051_v31 = vadd.f32 %v1002_v4, %v292_v29  ;;  %v301_v46 = vmul.f32 %v986_v2, %v281_v43  ;;  %v894_v0 = vld [vmem:[%s1234_s4 + $0x18] sm:$0xff]  ;;  %v893_v3 = vld [vmem:[%s1234_s4 + $0x10] sm:$0xff]  ;;  %v891_v5 = vld [vmem:[%s1234_s4] sm:$0xff] }
  0x15   : > { %v1060_v37 = vadd.f32 %v1002_v4, %v297_v34  ;;  %v1063_v38 = vadd.f32 %v1002_v4, %v298_v35  ;;  %v302_v48 = vmul.f32 %v986_v2, %v282_v45  ;;  %v293_v49 = vmul.f32 %v986_v2, %v273_v40  ;;  %559 = vmatpush.bf16.msra.mxu1 %v896_v56 }
  0x16   : > { %v325_v36 = vpack.c.bf16 %v1051_v31, %v1048_v30  ;;  %v1082_v50 = vadd.f32 %v1002_v4, %v301_v46  ;;  %v294_v52 = vmul.f32 %v986_v2, %v274_v41  ;;  %v299_v53 = vmul.f32 %v986_v2, %v279_v42  ;;  %905 = vmatpush.bf16.msra.mxu2 %v896_v56 }
  0x17   : > { %v328_v39 = vpack.c.bf16 %v1063_v38, %v1060_v37  ;;  %v300_v54 = vmul.f32 %v986_v2, %v280_v44  ;;  %v1091_v55 = vadd.f32 %v1002_v4, %v302_v48  ;;  %v1097_v57 = vadd.f32 %v1002_v4, %v293_v49 }
  0x18   : > { %395 = vmatpush.bf16.msra.mxu0 %v887_v9  ;;  %902 = vmatpush.bf16.msra.mxu3 %v887_v9  ;;  %v1100_v58 = vadd.f32 %v1002_v4, %v294_v52  ;;  %v1103_v59 = vadd.f32 %v1002_v4, %v299_v53  ;;  %v327_v1 = vpack.c.bf16 %v1043_v27, %v1040_v26 }
  0x19   : > { %v1106_v60 = vadd.f32 %v1002_v4, %v300_v54  ;;  %560 = vmatpush.bf16.msra.mxu1 %v895_v61  ;;  %v330_v2 = vpack.c.bf16 %v1091_v55, %v1082_v50  ;;  %v892_v4 = vld [vmem:[%s1234_s4 + $0x8] sm:$0xff] }
  0x1a   : > { %v326_v62 = vpack.c.bf16 %v1100_v58, %v1097_v57  ;;  %906 = vmatpush.bf16.msra.mxu2 %v895_v61 }
  0x1b   : > { %845 = vmatmul.msk.bf16.vlgmr.msra.gmra.mxu0 %vm363_vm0, %v323_v12  ;;  %850 = vmatmul.msk.bf16.vlgmr.msra.gmra.mxu3 %vm363_vm0, %v328_v39  ;;  %v329_v63 = vpack.c.bf16 %v1106_v60, %v1103_v59 }
  0x1d   : > { %561 = vmatpush.bf16.msra.mxu1 %v894_v0 }
  0x1e   : > { %907 = vmatpush.bf16.msra.mxu2 %v894_v0 }
  0x21   : > { %562 = vmatpush.bf16.msra.mxu1 %v893_v3 }
  0x22   : > { %908 = vmatpush.bf16.msra.mxu2 %v893_v3 }
  0x25   : > { %563 = vmatpush.bf16.msra.mxu1 %v892_v4 }
  0x26   : > { %909 = vmatpush.bf16.msra.mxu2 %v892_v4 }
  0x29   : > { %564 = vmatpush.bf16.msra.mxu1 %v891_v5 }
  0x2a   : > { %910 = vmatpush.bf16.msra.mxu2 %v891_v5 }
  0x2b   : > { %846 = vmatmul.msk.bf16.gmra.mxu0 %vm363_vm0, %v324_v19  ;;  %851 = vmatmul.msk.bf16.gmra.mxu3 %vm363_vm0, %v329_v63 }
  0x3b   : > { %847 = vmatmul.msk.bf16.gmra.mxu0 %vm363_vm0, %v325_v36  ;;  %852 = vmatmul.msk.bf16.gmra.mxu3 %vm363_vm0, %v330_v2 }
  0x4b   : > { %848 = vmatmul.msk.bf16.gmra.mxu0 %vm363_vm0, %v326_v62 }
  0x5b   : > { %849 = vmatmul.msk.bf16.gmra.mxu0 %vm363_vm0, %v327_v1 }
  0x98   : > { %v397_v6 = vpop.f32.mrf.mxu0 }
  0x99   : > { %v453_v7 = vmul.f32 0.2, %v397_v6  ;;  %vm437_vm1 = vcmp.ge.f32.partialorder %v397_v6, 0.0 }
  0x9b   : > { %v469_v12 = vsel %vm437_vm1, %v397_v6, %v453_v7 }
  0x9e   : > { %v422_v45 = vpop.f32.mrf.mxu3 }
  0x9f   : > { %v463_v56 = vmul.f32 0.2, %v422_v45  ;;  %vm447_vm11 = vcmp.ge.f32.partialorder %v422_v45, 0.0 }
  0xa0   : > { %v399_v8 = vpop.f32.mrf.mxu0 }
  0xa1   : > { %vm438_vm2 = vcmp.ge.f32.partialorder %v399_v8, 0.0  ;;  %v454_v9 = vmul.f32 0.2, %v399_v8  ;;  %v479_v62 = vsel %vm447_vm11, %v422_v45, %v463_v56 }
  0xa3   : > { %v470_v13 = vsel %vm438_vm2, %v399_v8, %v454_v9  ;;  %vm728_vm2 = vcmask 1040384  }
  0xa4   : > { %v485_v14 = vpack.c.bf16 %v470_v13, %v469_v12 }
  0xa6   : > { %565 = vmatmul.bf16.vlgmr.msra.gmra.mxu1 %v485_v14  ;;  %v424_v49 = vpop.f32.mrf.mxu3 }
  0xa7   : > { %v464_v61 = vmul.f32 0.2, %v424_v49  ;;  %vm448_vm12 = vcmp.ge.f32.partialorder %v424_v49, 0.0 }
  0xa8   : > { %v402_v15 = vpop.f32.mrf.mxu0 }
  0xa9   : > { %v455_v16 = vmul.f32 0.2, %v402_v15  ;;  %vm439_vm3 = vcmp.ge.f32.partialorder %v402_v15, 0.0  ;;  %v480_v63 = vsel %vm448_vm12, %v424_v49, %v464_v61 }
  0xaa   : > { %v490_v0 = vpack.c.bf16 %v480_v63, %v479_v62 }
  0xab   : > { %v471_v21 = vsel %vm439_vm3, %v402_v15, %v455_v16 }
  0xae   : > { %v427_v54 = vpop.f32.mrf.mxu3 }
  0xaf   : > { %v465_v2 = vmul.f32 0.2, %v427_v54  ;;  %vm449_vm13 = vcmp.ge.f32.partialorder %v427_v54, 0.0 }
  0xb0   : > { %v404_v19 = vpop.f32.mrf.mxu0 }
  0xb1   : > { %vm440_vm4 = vcmp.ge.f32.partialorder %v404_v19, 0.0  ;;  %v456_v20 = vmul.f32 0.2, %v404_v19  ;;  %v481_v5 = vsel %vm449_vm13, %v427_v54, %v465_v2 }
  0xb3   : > { %v472_v22 = vsel %vm440_vm4, %v404_v19, %v456_v20 }
  0xb4   : > { %v486_v23 = vpack.c.bf16 %v472_v22, %v471_v21 }
  0xb6   : > { %570 = vmatmul.bf16.gmra.mxu1 %v486_v23  ;;  %v429_v1 = vpop.f32.mrf.mxu3 }
  0xb7   : > { %v466_v3 = vmul.f32 0.2, %v429_v1  ;;  %vm450_vm14 = vcmp.ge.f32.partialorder %v429_v1, 0.0 }
  0xb8   : > { %v407_v24 = vpop.f32.mrf.mxu0 }
  0xb9   : > { %v457_v25 = vmul.f32 0.2, %v407_v24  ;;  %vm441_vm5 = vcmp.ge.f32.partialorder %v407_v24, 0.0  ;;  %v482_v6 = vsel %vm450_vm14, %v429_v1, %v466_v3 }
  0xba   : > { %v491_v7 = vpack.c.bf16 %v482_v6, %v481_v5 }
  0xbb   : > { %v473_v32 = vsel %vm441_vm5, %v407_v24, %v457_v25 }
  0xbe   : > { %v432_v4 = vpop.f32.mrf.mxu3 }
  0xbf   : > { %v467_v9 = vmul.f32 0.2, %v432_v4  ;;  %vm451_vm15 = vcmp.ge.f32.partialorder %v432_v4, 0.0 }
  0xc0   : > { %v409_v28 = vpop.f32.mrf.mxu0 }
  0xc1   : > { %vm442_vm6 = vcmp.ge.f32.partialorder %v409_v28, 0.0  ;;  %v458_v29 = vmul.f32 0.2, %v409_v28  ;;  %v483_v14 = vsel %vm451_vm15, %v432_v4, %v467_v9 }
  0xc3   : > { %v474_v33 = vsel %vm442_vm6, %v409_v28, %v458_v29 }
  0xc4   : > { %v487_v34 = vpack.c.bf16 %v474_v33, %v473_v32 }
  0xc6   : > { %575 = vmatmul.bf16.gmra.mxu1 %v487_v34  ;;  %v434_v8 = vpop.f32.mrf.mxu3 }
  0xc7   : > { %v468_v12 = vmul.f32 0.2, %v434_v8  ;;  %vm452_vm1 = vcmp.ge.f32.partialorder %v434_v8, 0.0 }
  0xc8   : > { %v412_v35 = vpop.f32.mrf.mxu0 }
  0xc9   : > { %v459_v36 = vmul.f32 0.2, %v412_v35  ;;  %vm443_vm7 = vcmp.ge.f32.partialorder %v412_v35, 0.0  ;;  %v484_v13 = vsel %vm452_vm1, %v434_v8, %v468_v12 }
  0xca   : > { %v492_v15 = vpack.c.bf16 %v484_v13, %v483_v14 }
  0xcb   : > { %v475_v41 = vsel %vm443_vm7, %v412_v35, %v459_v36 }
  0xd0   : > { %v414_v39 = vpop.f32.mrf.mxu0 }
  0xd1   : > { %vm444_vm8 = vcmp.ge.f32.partialorder %v414_v39, 0.0  ;;  %v460_v40 = vmul.f32 0.2, %v414_v39 }
  0xd3   : > { %v476_v42 = vsel %vm444_vm8, %v414_v39, %v460_v40 }
  0xd4   : > { %v488_v43 = vpack.c.bf16 %v476_v42, %v475_v41 }
  0xd6   : > { %580 = vmatmul.bf16.gmra.mxu1 %v488_v43 }
  0xd8   : > { %v417_v44 = vpop.f32.mrf.mxu0 }
  0xd9   : > { %v461_v46 = vmul.f32 0.2, %v417_v44  ;;  %vm445_vm9 = vcmp.ge.f32.partialorder %v417_v44, 0.0 }
  0xdb   : > { %v477_v52 = vsel %vm445_vm9, %v417_v44, %v461_v46 }
  0xe0   : > { %v419_v47 = vpop.f32.mrf.mxu0 }
  0xe1   : > { %vm446_vm10 = vcmp.ge.f32.partialorder %v419_v47, 0.0  ;;  %v462_v48 = vmul.f32 0.2, %v419_v47 }
  0xe3   : > { %v478_v51 = vsel %vm446_vm10, %v419_v47, %v462_v48 }
  0xe4   : > { %v489_v53 = vpack.c.bf16 %v478_v51, %v477_v52 }
  0xe6   : > { %585 = vmatmul.bf16.vlgmr.msra.gmra.mxu2 %v489_v53 }
  0xf6   : > { %590 = vmatmul.bf16.gmra.mxu2 %v490_v0 }
 0x106   : > { %595 = vmatmul.bf16.gmra.mxu2 %v491_v7 }
 0x116   : > { %600 = vmatmul.bf16.gmra.mxu2 %v492_v15 }
 0x123   : > { %v566_v16 = vpop.f32.mrf.mxu1 }
 0x124   : > { %v606_v19 = vadd.f32 %v566_v16, %v1012_v10 }
 0x126   : > { %622 = vst.msk [vmem:[%s1140_s14] sm:$0xff] %vm363_vm0, %v606_v19  ;;  %v675_v21 = vmul.f32 %v606_v19, %v606_v19  ;;  %v638_v23 = vsel %vm363_vm0, %v606_v19, 0.0 }
 0x128   : > { %v691_v29 = vsel %vm363_vm0, %v675_v21, 0.0 }
 0x12b   : > { %v568_v20 = vpop.f32.mrf.mxu1 }
 0x12c   : > { %v607_v22 = vadd.f32 %v568_v20, %v1015_v11 }
 0x12e   : > { %623 = vst.msk [vmem:[%s1140_s14 + $0x8] sm:$0xff] %vm363_vm0, %v607_v22  ;;  %v639_v24 = vsel %vm363_vm0, %v607_v22, 0.0  ;;  %v676_v25 = vmul.f32 %v607_v22, %v607_v22 }
 0x12f   : > { %v640_v28 = vadd.f32 %v639_v24, %v638_v23 }
 0x130   : > { %v692_v32 = vsel %vm363_vm0, %v676_v25, 0.0 }
 0x131   : > { %v693_v10 = vadd.f32 %v692_v32, %v691_v29 }
 0x133   : > { %v571_v33 = vpop.f32.mrf.mxu1 }
 0x134   : > { %v608_v34 = vadd.f32 %v571_v33, %v1025_v17 }
 0x136   : > { %624 = vst.msk [vmem:[%s1140_s14 + $0x10] sm:$0xff] %vm363_vm0, %v608_v34  ;;  %v641_v11 = vsel %vm363_vm0, %v608_v34, 0.0  ;;  %v677_v35 = vmul.f32 %v608_v34, %v608_v34 }
 0x137   : > { %v642_v36 = vadd.f32 %v641_v11, %v640_v28 }
 0x138   : > { %v694_v39 = vsel %vm363_vm0, %v677_v35, 0.0 }
 0x139   : > { %v695_v40 = vadd.f32 %v694_v39, %v693_v10 }
 0x13b   : > { %v573_v41 = vpop.f32.mrf.mxu1 }
 0x13c   : > { %v609_v42 = vadd.f32 %v573_v41, %v1028_v18 }
 0x13e   : > { %625 = vst.msk [vmem:[%s1140_s14 + $0x18] sm:$0xff] %vm363_vm0, %v609_v42  ;;  %v643_v43 = vsel %vm363_vm0, %v609_v42, 0.0  ;;  %v678_v44 = vmul.f32 %v609_v42, %v609_v42 }
 0x13f   : > { %v644_v17 = vadd.f32 %v643_v43, %v642_v36 }
 0x140   : > { %v696_v45 = vsel %vm363_vm0, %v678_v44, 0.0 }
 0x141   : > { %v697_v46 = vadd.f32 %v696_v45, %v695_v40 }
 0x143   : > { %v576_v47 = vpop.f32.mrf.mxu1 }
 0x144   : > { %v610_v48 = vadd.f32 %v576_v47, %v1048_v30 }
 0x146   : > { %626 = vst.msk [vmem:[%s1140_s14 + $0x20] sm:$0xff] %vm363_vm0, %v610_v48  ;;  %v645_v49 = vsel %vm363_vm0, %v610_v48, 0.0  ;;  %v679_v51 = vmul.f32 %v610_v48, %v610_v48 }
 0x147   : > { %v646_v18 = vadd.f32 %v645_v49, %v644_v17 }
 0x148   : > { %v698_v52 = vsel %vm363_vm0, %v679_v51, 0.0 }
 0x149   : > { %v699_v53 = vadd.f32 %v698_v52, %v697_v46 }
 0x14b   : > { %v578_v54 = vpop.f32.mrf.mxu1 }
 0x14c   : > { %v611_v56 = vadd.f32 %v578_v54, %v1051_v31 }
 0x14e   : > { %627 = vst.msk [vmem:[%s1140_s14 + $0x28] sm:$0xff] %vm363_vm0, %v611_v56  ;;  %v647_v61 = vsel %vm363_vm0, %v611_v56, 0.0  ;;  %v680_v30 = vmul.f32 %v611_v56, %v611_v56 }
 0x14f   : > { %v648_v62 = vadd.f32 %v647_v61, %v646_v18 }
 0x150   : > { %v700_v63 = vsel %vm363_vm0, %v680_v30, 0.0 }
 0x151   : > { %v701_v0 = vadd.f32 %v700_v63, %v699_v53 }
 0x153   : > { %v581_v1 = vpop.f32.mrf.mxu1 }
 0x154   : > { %v612_v2 = vadd.f32 %v581_v1, %v1097_v57 }
 0x156   : > { %628 = vst.msk [vmem:[%s1140_s14 + $0x30] sm:$0xff] %vm363_vm0, %v612_v2  ;;  %v681_v13 = vmul.f32 %v612_v2, %v612_v2 }
 0x15b   : > { %v583_v3 = vpop.f32.mrf.mxu1 }
 0x15c   : > { %v613_v31 = vadd.f32 %v583_v3, %v1100_v58 }
 0x15e   : > { %629 = vst.msk [vmem:[%s1140_s14 + $0x38] sm:$0xff] %vm363_vm0, %v613_v31  ;;  %v682_v14 = vmul.f32 %v613_v31, %v613_v31  ;;  %v651_v16 = vsel %vm363_vm0, %v613_v31, 0.0 }
 0x160   : > { %v704_v21 = vsel %vm363_vm0, %v682_v14, 0.0 }
 0x169   : > { %v586_v4 = vpop.f32.mrf.mxu2 }
 0x16a   : > { %v614_v5 = vadd.f32 %v586_v4, %v1040_v26 }
 0x16c   : > { %630 = vst.msk [vmem:[%s1140_s14 + $0x40] sm:$0xff] %vm363_vm0, %v614_v5  ;;  %v683_v19 = vmul.f32 %v614_v5, %v614_v5  ;;  %v653_v22 = vsel %vm363_vm0, %v614_v5, 0.0 }
 0x16e   : > { %v706_v25 = vsel %vm363_vm0, %v683_v19, 0.0 }
 0x171   : > { %v588_v6 = vpop.f32.mrf.mxu2 }
 0x172   : > { %v615_v7 = vadd.f32 %v588_v6, %v1043_v27  ;;  %v649_v27 = vsel %vm363_vm0, %v612_v2, 0.0 }
 0x173   : > { %v650_v20 = vadd.f32 %v649_v27, %v648_v62 }
 0x174   : > { %631 = vst.msk [vmem:[%s1140_s14 + $0x48] sm:$0xff] %vm363_vm0, %v615_v7  ;;  %v655_v28 = vsel %vm363_vm0, %v615_v7, 0.0 }
 0x175   : > { %v652_v24 = vadd.f32 %v651_v16, %v650_v20 }
 0x177   : > { %v654_v10 = vadd.f32 %v653_v22, %v652_v24 }
 0x179   : > { %v591_v57 = vpop.f32.mrf.mxu2  ;;  %v656_v35 = vadd.f32 %v655_v28, %v654_v10 }
 0x17a   : > { %v616_v8 = vadd.f32 %v591_v57, %v1060_v37  ;;  %v702_v37 = vsel %vm363_vm0, %v681_v13, 0.0 }
 0x17b   : > { %v703_v23 = vadd.f32 %v702_v37, %v701_v0 }
 0x17c   : > { %632 = vst.msk [vmem:[%s1140_s14 + $0x50] sm:$0xff] %vm363_vm0, %v616_v8  ;;  %v685_v29 = vmul.f32 %v616_v8, %v616_v8  ;;  %v657_v33 = vsel %vm363_vm0, %v616_v8, 0.0 }
 0x17d   : > { %v705_v32 = vadd.f32 %v704_v21, %v703_v23  ;;  %v658_v44 = vadd.f32 %v657_v33, %v656_v35 }
 0x17e   : > { %v710_v39 = vsel %vm363_vm0, %v685_v29, 0.0 }
 0x17f   : > { %v707_v11 = vadd.f32 %v706_v25, %v705_v32 }
 0x181   : > { %v593_v9 = vpop.f32.mrf.mxu2 }
 0x182   : > { %v617_v58 = vadd.f32 %v593_v9, %v1063_v38 }
 0x184   : > { %633 = vst.msk [vmem:[%s1140_s14 + $0x58] sm:$0xff] %vm363_vm0, %v617_v58  ;;  %v686_v34 = vmul.f32 %v617_v58, %v617_v58  ;;  %v659_v40 = vsel %vm363_vm0, %v617_v58, 0.0 }
 0x185   : > { %v660_v48 = vadd.f32 %v659_v40, %v658_v44 }
 0x186   : > { %v712_v17 = vsel %vm363_vm0, %v686_v34, 0.0 }
 0x189   : > { %v596_v12 = vpop.f32.mrf.mxu2 }
 0x18a   : > { %v618_v26 = vadd.f32 %v596_v12, %v1103_v59  ;;  %v684_v59 = vmul.f32 %v615_v7, %v615_v7 }
 0x18c   : > { %634 = vst.msk [vmem:[%s1140_s14 + $0x60] sm:$0xff] %vm363_vm0, %v618_v26  ;;  %v687_v41 = vmul.f32 %v618_v26, %v618_v26  ;;  %v661_v45 = vsel %vm363_vm0, %v618_v26, 0.0 }
 0x18d   : > { %v662_v53 = vadd.f32 %v661_v45, %v660_v48 }
 0x18e   : > { %v714_v49 = vsel %vm363_vm0, %v687_v41, 0.0 }
 0x191   : > { %v598_v15 = vpop.f32.mrf.mxu2 }
 0x192   : > { %v619_v38 = vadd.f32 %v598_v15, %v1106_v60  ;;  %v708_v60 = vsel %vm363_vm0, %v684_v59, 0.0 }
 0x193   : > { %v709_v43 = vadd.f32 %v708_v60, %v707_v11 }
 0x194   : > { %635 = vst.msk [vmem:[%s1140_s14 + $0x68] sm:$0xff] %vm363_vm0, %v619_v38  ;;  %v688_v46 = vmul.f32 %v619_v38, %v619_v38  ;;  %v663_v51 = vsel %vm363_vm0, %v619_v38, 0.0 }
 0x195   : > { %v711_v47 = vadd.f32 %v710_v39, %v709_v43  ;;  %v664_v61 = vadd.f32 %v663_v51, %v662_v53 }
 0x197   : > { %v713_v52 = vadd.f32 %v712_v17, %v711_v47 }
 0x199   : > { %v601_v36 = vpop.f32.mrf.mxu2  ;;  %v715_v56 = vadd.f32 %v714_v49, %v713_v52 }
 0x19a   : > { %v620_v42 = vadd.f32 %v601_v36, %v1082_v50  ;;  %v716_v50 = vsel %vm363_vm0, %v688_v46, 0.0 }
 0x19b   : > { %v717_v0 = vadd.f32 %v716_v50, %v715_v56 }
 0x19c   : > { %636 = vst.msk [vmem:[%s1140_s14 + $0x70] sm:$0xff] %vm363_vm0, %v620_v42  ;;  %v689_v18 = vmul.f32 %v620_v42, %v620_v42  ;;  %v665_v54 = vsel %vm363_vm0, %v620_v42, 0.0 }
 0x19d   : > { %v666_v1 = vadd.f32 %v665_v54, %v664_v61 }
 0x19e   : > { %v718_v62 = vsel %vm363_vm0, %v689_v18, 0.0 }
 0x19f   : > { %v719_v31 = vadd.f32 %v718_v62, %v717_v0 }
 0x1a1   : > { %v603_v30 = vpop.f32.mrf.mxu2 }
 0x1a2   : > { %v621_v63 = vadd.f32 %v603_v30, %v1091_v55 }
 0x1a4   : > { %637 = vst.msk [vmem:[%s1140_s14 + $0x78] sm:$0xff] %vm363_vm0, %v621_v63  ;;  %v667_v2 = vsel %vm363_vm0, %v621_v63, 0.0  ;;  %v690_v3 = vmul.f32 %v621_v63, %v621_v63 }
 0x1a5   : > { %v668_v4 = vadd.f32 %v667_v2, %v666_v1 }
 0x1a6   : > { %v720_v5 = vsel %vm363_vm0, %v690_v3, 0.0  ;;  %vm730_vm0 = vcmask 517120  }
 0x1a7   : > { %v669_v6 = vrot.slane %v668_v4, 4  ;;  %v721_v7 = vadd.f32 %v720_v5, %v719_v31 }
 0x1a9   : > { %v670_v57 = vadd.f32 %v669_v6, %v668_v4  ;;  %v722_v8 = vrot.slane %v721_v7, 4 }
 0x1ab   : > { %v671_v9 = vrot.slane %v670_v57, 2  ;;  %v723_v58 = vadd.f32 %v722_v8, %v721_v7 }
 0x1ad   : > { %v672_v55 = vadd.f32 %v671_v9, %v670_v57  ;;  %v724_v12 = vrot.slane %v723_v58, 2 }
 0x1af   : > { %v673_v26 = vrot.slane %v672_v55, 1  ;;  %v725_v13 = vadd.f32 %v724_v12, %v723_v58 }
 0x1b1   : > { %v726_v27 = vrot.slane %v725_v13, 1  ;;  %v674_v14 = vadd.f32 %v673_v26, %v672_v55 }
 0x1b3   : > { %v727_v15 = vadd.f32 %v726_v27, %v725_v13 }
 0x1b5   : > { %v729_v37 = vsel %vm728_vm2, %v674_v14, %v727_v15 }
 0x1b6   : > { %731 = vst.msk [vmem:[%s265_s16] sm:$0x3] %vm730_vm0, %v729_v37 }
 0x1b7 PF: > { %s17_s21 = sadd.s32 1, %s927_s21  }
 0x1b8   : > { %p14_p5 = scmp.ge.s32.totalorder %s17_s21, 6  }
 0x1ba   :  { %16 = sbr.rel (!%p14_p5) target bundleno = 1 (0x1), region = 82 }

// kernel: point2point_attention.2
= control target key start
LH: loop header
LB: loop body
LE: loop exit
PB: predicated region body
PF: predicated region fallthrough
CT: control target
= control target key end

     0   :  { %s2390_s21 = smov 0   ;;  %s2392_s22 = smov 0   ;;  %s3239_s0 = inlined_call_operand.vmem [shape: f32[2,256,64], index: 0, kind: input, shape index: {}, may-alias: {0,1}]   ;;  %s3240_s1 = inlined_call_operand.vmem [shape: f32[2,256,64], index: 1, kind: input, shape index: {}, may-alias: {0,1}]   ;;  %s3241_s2 = inlined_call_operand.vmem [shape: bf16[64,64], index: 2, kind: input, shape index: {}]   ;;  %s3242_s3 = inlined_call_operand.vmem [shape: bf16[64,64], index: 3, kind: input, shape index: {}]   ;;  %s3243_s4 = inlined_call_operand.vmem [shape: bf16[64,64], index: 4, kind: input, shape index: {}]   ;;  %s3244_s5 = inlined_call_operand.vmem [shape: f32[2,256,64], index: 5, kind: output, shape index: {0}]   ;;  %s3245_s6 = inlined_call_operand.vmem [shape: f32[2,2,2,64], index: 6, kind: output, shape index: {1}]  }
   0x1   :  { %s2394_s23 = smov 0   ;;  %s2396_s24 = smov 0  }
   0x2   :  { %s2398_s25 = smov 0   ;;  %s2400_s26 = smov 0  }
   0x3   :  { %s2402_s27 = smov 0  }
   0x4 LB: > { %s29_s28 = sadd.s32 1, %s2337_s24  ;;  %s32_s29 = sadd.s32 1, %s2341_s25  ;;  %s2349_s27 = sphi %s2402_s27, %s17_s27   ;;  %s2345_s26 = sphi %s2400_s26, %s3265_s26   ;;  %s2341_s25 = sphi %s2398_s25, %s3264_s25   ;;  %s2337_s24 = sphi %s2396_s24, %s3263_s24   ;;  %s2333_s23 = sphi %s2394_s23, %s3262_s23   ;;  %s2329_s22 = sphi %s2392_s22, %s3261_s22   ;;  %s2325_s21 = sphi %s2390_s21, %s3260_s21  }
   0x5   : > { %p30_p0 = scmp.ge.s32.totalorder %s29_s28, 2  ;;  %p1961_p1 = scmp.ge.s32.totalorder %s2349_s27, 1 }
   0x6   : > { %p262_p2 = scmp.lt.s32.totalorder %s2349_s27, 9  ;;  %s36_s30 = sadd.s32 1, %s2345_s26 }
   0x7   : > { %s3267_s28 = smov (%p30_p0, %s29_s28), 0  ;;  %s3269_s29 = smov (!%p30_p0, %s32_s29), %s2341_s25 }
   0x8   : > { %3246 = sst [smem:[#allocation6_spill]] %s3267_s28  ;;  %p263_p3 = pnand %p1961_p1, %p262_p2 }
   0x9   : > { %p34_p4 = scmp.ge.s32.totalorder %s3269_s29, 2  ;;  %s1962_s7 = sshll.u32 (!%p263_p3), %s2329_s22, 4 }
   0xa   : > { %p318_p6 = scmp.lt.s32.totalorder (!%p263_p3), %s2333_s23, 1  ;;  %p320_p7 = scmp.lt.s32.totalorder (!%p263_p3), %s1962_s7, 31 }
   0xb   : > { %s3271_s29 = smov (%p34_p4, %s3269_s29), 0  ;;  %s3273_s30 = smov (!%p34_p4, %s36_s30), %s2345_s26 }
   0xc   : > { %3247 = sst [smem:[#allocation7_spill]] %s3271_s29  ;;  %p38_p5 = scmp.ge.s32.totalorder %s3273_s30, 2 }
   0xd   : > { %266 = sbr.rel (%p263_p3) target bundleno = 1543 (0x607), region = 40  ;;  %s1965_s8 = sshll.u32 (!%p263_p3), %s2325_s21, 4 }
   0xe   : > { %s3275_s30 = smov (%p38_p5, %s3273_s30), 0  ;;  %p330_p8 = scmp.lt.s32.totalorder (!%p263_p3), %s1965_s8, 31 }
   0xf   : > { %3248 = sst [smem:[#allocation8_spill]] %s3275_s30  ;;  %p349_p9 = scmp.lt.s32.totalorder (!%p263_p3), %s2329_s22, 1 }
  0x10   : > { %p1973_p10 = scmp.ne.s32.totalorder (!%p263_p3), %s2325_s21, 0 }
  0x12   : > { %s3277_s23 = smov (!%p318_p6, %s2333_s23), 1  ;;  %s3279_s7 = smov (!%p320_p7, %s1962_s7), 31 }
  0x13   : > { %s1963_s9 = sshll.u32 %s3277_s23, 5  ;;  %s1971_s12 = sshll.u32 %s3277_s23, 1 }
  0x14   : > { %s323_s10 = sadd.s32 %s1963_s9, %s3279_s7  ;;  %s3281_s8 = smov (!%p330_p8, %s1965_s8), 31 }
  0x15   : > { %s1964_s11 = sshll.u32 %s323_s10, 3  ;;  %s3283_s22 = smov (!%p349_p9, %s2329_s22), 1 }
  0x16   : > { %s2442_s15 = scalar_lea.vmem %s3239_s0, %s1964_s11  ;;  %s2447_s18 = scalar_lea.vmem %s3244_s5, %s1964_s11 }
  0x17   : > { %s333_s19 = sadd.s32 %s1963_s9, %s3281_s8  ;;  %s352_s30 = sadd.s32 %s1971_s12, %s3283_s22 }
  0x18   : > { %s1967_s20 = sshll.u32 %s333_s19, 3  ;;  %s1972_s23 = sshll.u32 %s352_s30, 1 }
  0x19   : > { %s2453_s10 = scalar_lea.vmem %s3240_s1, %s1967_s20  ;;  %s2458_s14 = scalar_lea.vmem %s3245_s6, %s1972_s23 }
  0x1a   : > { %359 = sbr.rel (%p1973_p10) target bundleno = 208 (0xd0), region = 44 }
  0x1f   : > { %v2092_v0 = vld [vmem:[%s3241_s2 + $0x18] sm:$0xff]  ;;  %vm523_vm0 = vcmask 7168   ;;  %v2351_v1 = vmov -inf   ;;  %v2091_v2 = vld [vmem:[%s3241_s2 + $0x10] sm:$0xff]  ;;  %v2090_v3 = vld [vmem:[%s3241_s2 + $0x8] sm:$0xff]  ;;  %vm416_vm1 = vcmask 523264  }
  0x20   : > { %524 = vst.msk [vmem:[#allocation3] sm:$0xff] %vm523_vm0, %v2351_v1  ;;  %445 = vmatpush.bf16.msra.mxu0 %v2092_v0  ;;  %2109 = vmatpush.bf16.msra.mxu1 %v2092_v0  ;;  %v2089_v4 = vld [vmem:[%s3241_s2] sm:$0xff]  ;;  %v361_v6 = vld [vmem:[%s2442_s15 + $0x8] sm:$0xff]  ;;  %v2352_v17 = vmov 0.0   ;;  %v362_v18 = vld [vmem:[%s2442_s15 + $0x10] sm:$0xff]  ;;  %vm506_vm2 = vcmask 519168  }
  0x21   : > { %525 = vst.msk [vmem:[#allocation3 + $0x8] sm:$0xff] %vm523_vm0, %v2351_v1  ;;  %2110 = vmatpush.bf16.msra.mxu2 %v2092_v0  ;;  %2111 = vmatpush.bf16.msra.mxu3 %v2092_v0  ;;  %v360_v5 = vld [vmem:[%s2442_s15] sm:$0xff]  ;;  %v365_v8 = vld [vmem:[%s2442_s15 + $0x28] sm:$0xff]  ;;  %v363_v19 = vld [vmem:[%s2442_s15 + $0x18] sm:$0xff] }
  0x22   : > { %526 = vst.msk [vmem:[#allocation3 + $0x10] sm:$0xff] %vm523_vm0, %v2351_v1  ;;  %v364_v7 = vld [vmem:[%s2442_s15 + $0x20] sm:$0xff]  ;;  %v369_v10 = vld [vmem:[%s2442_s15 + $0x48] sm:$0xff]  ;;  %v376_v13 = vpack.c.bf16 %v361_v6, %v360_v5  ;;  %v366_v20 = vld [vmem:[%s2442_s15 + $0x30] sm:$0xff]  ;;  %v377_v26 = vpack.c.bf16 %v363_v19, %v362_v18 }
  0x23   : > { %527 = vst.msk [vmem:[#allocation3 + $0x18] sm:$0xff] %vm523_vm0, %v2351_v1  ;;  %v368_v9 = vld [vmem:[%s2442_s15 + $0x40] sm:$0xff]  ;;  %v373_v12 = vld [vmem:[%s2442_s15 + $0x68] sm:$0xff]  ;;  %v378_v14 = vpack.c.bf16 %v365_v8, %v364_v7  ;;  %v367_v21 = vld [vmem:[%s2442_s15 + $0x38] sm:$0xff] }
  0x24   : > { %528 = vst.msk [vmem:[#allocation3 + $0x20] sm:$0xff] %vm523_vm0, %v2351_v1  ;;  %446 = vmatpush.bf16.msra.mxu0 %v2091_v2  ;;  %2112 = vmatpush.bf16.msra.mxu1 %v2091_v2  ;;  %v372_v11 = vld [vmem:[%s2442_s15 + $0x60] sm:$0xff]  ;;  %v380_v15 = vpack.c.bf16 %v369_v10, %v368_v9  ;;  %v370_v22 = vld [vmem:[%s2442_s15 + $0x50] sm:$0xff]  ;;  %v371_v23 = vld [vmem:[%s2442_s15 + $0x58] sm:$0xff]  ;;  %v379_v27 = vpack.c.bf16 %v367_v21, %v366_v20 }
  0x25   : > { %529 = vst.msk [vmem:[#allocation3 + $0x28] sm:$0xff] %vm523_vm0, %v2351_v1  ;;  %2113 = vmatpush.bf16.msra.mxu2 %v2091_v2  ;;  %2114 = vmatpush.bf16.msra.mxu3 %v2091_v2  ;;  %v382_v16 = vpack.c.bf16 %v373_v12, %v372_v11  ;;  %v374_v24 = vld [vmem:[%s2442_s15 + $0x70] sm:$0xff]  ;;  %v375_v25 = vld [vmem:[%s2442_s15 + $0x78] sm:$0xff]  ;;  %v381_v28 = vpack.c.bf16 %v371_v23, %v370_v22 }
  0x26   : > { %530 = vst.msk [vmem:[#allocation3 + $0x30] sm:$0xff] %vm523_vm0, %v2351_v1  ;;  %v383_v29 = vpack.c.bf16 %v375_v25, %v374_v24 }
  0x27   : > { %531 = vst.msk [vmem:[#allocation3 + $0x38] sm:$0xff] %vm523_vm0, %v2351_v1 }
  0x28   : > { %532 = vst.msk [vmem:[#allocation3 + $0x40] sm:$0xff] %vm523_vm0, %v2351_v1  ;;  %447 = vmatpush.bf16.msra.mxu0 %v2090_v3  ;;  %2115 = vmatpush.bf16.msra.mxu1 %v2090_v3 }
  0x29   : > { %533 = vst.msk [vmem:[#allocation3 + $0x48] sm:$0xff] %vm523_vm0, %v2351_v1  ;;  %2116 = vmatpush.bf16.msra.mxu2 %v2090_v3  ;;  %2117 = vmatpush.bf16.msra.mxu3 %v2090_v3 }
  0x2a   : > { %534 = vst.msk [vmem:[#allocation3 + $0x50] sm:$0xff] %vm523_vm0, %v2351_v1 }
  0x2b   : > { %535 = vst.msk [vmem:[#allocation3 + $0x58] sm:$0xff] %vm523_vm0, %v2351_v1 }
  0x2c   : > { %536 = vst.msk [vmem:[#allocation3 + $0x60] sm:$0xff] %vm523_vm0, %v2351_v1  ;;  %448 = vmatpush.bf16.msra.mxu0 %v2089_v4  ;;  %2118 = vmatpush.bf16.msra.mxu1 %v2089_v4 }
  0x2d   : > { %537 = vst.msk [vmem:[#allocation3 + $0x68] sm:$0xff] %vm523_vm0, %v2351_v1  ;;  %2119 = vmatpush.bf16.msra.mxu2 %v2089_v4  ;;  %2120 = vmatpush.bf16.msra.mxu3 %v2089_v4 }
  0x2e   : > { %538 = vst.msk [vmem:[#allocation3 + $0x70] sm:$0xff] %vm523_vm0, %v2351_v1 }
  0x2f   : > { %539 = vst.msk [vmem:[#allocation3 + $0x78] sm:$0xff] %vm523_vm0, %v2351_v1  ;;  %1990 = vmatmul.msk.bf16.vlgmr.msra.gmra.mxu0 %vm416_vm1, %v376_v13  ;;  %1992 = vmatmul.msk.bf16.vlgmr.msra.gmra.mxu1 %vm416_vm1, %v378_v14 }
  0x30   : > { %540 = vst.msk [vmem:[#allocation4] sm:$0xff] %vm523_vm0, %v2352_v17  ;;  %1994 = vmatmul.msk.bf16.vlgmr.msra.gmra.mxu2 %vm416_vm1, %v380_v15  ;;  %1996 = vmatmul.msk.bf16.vlgmr.msra.gmra.mxu3 %vm416_vm1, %v382_v16 }
  0x31   : > { %541 = vst.msk [vmem:[#allocation4 + $0x8] sm:$0xff] %vm523_vm0, %v2352_v17 }
  0x32   : > { %542 = vst.msk [vmem:[#allocation4 + $0x10] sm:$0xff] %vm523_vm0, %v2352_v17 }
  0x33   : > { %543 = vst.msk [vmem:[#allocation4 + $0x18] sm:$0xff] %vm523_vm0, %v2352_v17 }
  0x34   : > { %544 = vst.msk [vmem:[#allocation4 + $0x20] sm:$0xff] %vm523_vm0, %v2352_v17 }
  0x35   : > { %545 = vst.msk [vmem:[#allocation4 + $0x28] sm:$0xff] %vm523_vm0, %v2352_v17 }
  0x36   : > { %546 = vst.msk [vmem:[#allocation4 + $0x30] sm:$0xff] %vm523_vm0, %v2352_v17 }
  0x37   : > { %547 = vst.msk [vmem:[#allocation4 + $0x38] sm:$0xff] %vm523_vm0, %v2352_v17 }
  0x38   : > { %548 = vst.msk [vmem:[#allocation4 + $0x40] sm:$0xff] %vm523_vm0, %v2352_v17 }
  0x39   : > { %549 = vst.msk [vmem:[#allocation4 + $0x48] sm:$0xff] %vm523_vm0, %v2352_v17 }
  0x3a   : > { %550 = vst.msk [vmem:[#allocation4 + $0x50] sm:$0xff] %vm523_vm0, %v2352_v17 }
  0x3b   : > { %551 = vst.msk [vmem:[#allocation4 + $0x58] sm:$0xff] %vm523_vm0, %v2352_v17 }
  0x3c   : > { %552 = vst.msk [vmem:[#allocation4 + $0x60] sm:$0xff] %vm523_vm0, %v2352_v17 }
  0x3d   : > { %553 = vst.msk [vmem:[#allocation4 + $0x68] sm:$0xff] %vm523_vm0, %v2352_v17 }
  0x3e   : > { %554 = vst.msk [vmem:[#allocation4 + $0x70] sm:$0xff] %vm523_vm0, %v2352_v17 }
  0x3f   : > { %555 = vst.msk [vmem:[#allocation4 + $0x78] sm:$0xff] %vm523_vm0, %v2352_v17  ;;  %1991 = vmatmul.msk.bf16.gmra.mxu0 %vm416_vm1, %v377_v26  ;;  %1993 = vmatmul.msk.bf16.gmra.mxu1 %vm416_vm1, %v379_v27 }
  0x40   : > { %556 = vst.msk [vmem:[#allocation5] sm:$0xff] %vm416_vm1, %v2352_v17  ;;  %1995 = vmatmul.msk.bf16.gmra.mxu2 %vm416_vm1, %v381_v28  ;;  %1997 = vmatmul.msk.bf16.gmra.mxu3 %vm416_vm1, %v383_v29 }
  0x41   : > { %557 = vst.msk [vmem:[#allocation5 + $0x8] sm:$0xff] %vm416_vm1, %v2352_v17 }
  0x42   : > { %558 = vst.msk [vmem:[#allocation5 + $0x10] sm:$0xff] %vm416_vm1, %v2352_v17 }
  0x43   : > { %559 = vst.msk [vmem:[#allocation5 + $0x18] sm:$0xff] %vm416_vm1, %v2352_v17 }
  0x44   : > { %560 = vst.msk [vmem:[#allocation5 + $0x20] sm:$0xff] %vm416_vm1, %v2352_v17 }
  0x45   : > { %561 = vst.msk [vmem:[#allocation5 + $0x28] sm:$0xff] %vm416_vm1, %v2352_v17 }
  0x46   : > { %562 = vst.msk [vmem:[#allocation5 + $0x30] sm:$0xff] %vm416_vm1, %v2352_v17 }
  0x47   : > { %563 = vst.msk [vmem:[#allocation5 + $0x38] sm:$0xff] %vm416_vm1, %v2352_v17 }
  0x48   : > { %564 = vst.msk [vmem:[#allocation5 + $0x40] sm:$0xff] %vm416_vm1, %v2352_v17 }
  0x49   : > { %565 = vst.msk [vmem:[#allocation5 + $0x48] sm:$0xff] %vm416_vm1, %v2352_v17 }
  0x4a   : > { %566 = vst.msk [vmem:[#allocation5 + $0x50] sm:$0xff] %vm416_vm1, %v2352_v17 }
  0x4b   : > { %567 = vst.msk [vmem:[#allocation5 + $0x58] sm:$0xff] %vm416_vm1, %v2352_v17 }
  0x4c   : > { %568 = vst.msk [vmem:[#allocation5 + $0x60] sm:$0xff] %vm416_vm1, %v2352_v17 }
  0x4d   : > { %569 = vst.msk [vmem:[#allocation5 + $0x68] sm:$0xff] %vm416_vm1, %v2352_v17 }
  0x4e   : > { %570 = vst.msk [vmem:[#allocation5 + $0x70] sm:$0xff] %vm416_vm1, %v2352_v17 }
  0x4f   : > { %571 = vst.msk [vmem:[#allocation5 + $0x78] sm:$0xff] %vm416_vm1, %v2352_v17 }
  0xac   : > { %v450_v30 = vpop.f32.mrf.mxu0  ;;  %v460_v31 = vpop.f32.mrf.mxu1 }
  0xad   : > { %v490_v32 = vpack.c.bf16 %v450_v30, %v450_v30  ;;  %v494_v33 = vpack.c.bf16 %v460_v31, %v460_v31 }
  0xaf   : > { %507 = vst.msk [vmem:[#allocation2] sm:$0xf] %vm506_vm2, %v490_v32 }
  0xb0   : > { %511 = vst.msk [vmem:[#allocation2 + $0x10] sm:$0xf] %vm506_vm2, %v494_v33 }
  0xb3   : > { %v470_v34 = vpop.f32.mrf.mxu2  ;;  %v480_v35 = vpop.f32.mrf.mxu3 }
  0xb4   : > { %v498_v36 = vpack.c.bf16 %v470_v34, %v470_v34  ;;  %v502_v37 = vpack.c.bf16 %v480_v35, %v480_v35  ;;  %v452_v38 = vpop.f32.mrf.mxu0  ;;  %v462_v39 = vpop.f32.mrf.mxu1 }
  0xb5   : > { %v491_v40 = vpack.c.bf16 %v452_v38, %v452_v38  ;;  %v495_v41 = vpack.c.bf16 %v462_v39, %v462_v39 }
  0xb6   : > { %515 = vst.msk [vmem:[#allocation2 + $0x20] sm:$0xf] %vm506_vm2, %v498_v36 }
  0xb7   : > { %519 = vst.msk [vmem:[#allocation2 + $0x30] sm:$0xf] %vm506_vm2, %v502_v37 }
  0xb8   : > { %508 = vst.msk [vmem:[#allocation2 + $0x4] sm:$0xf] %vm506_vm2, %v491_v40 }
  0xb9   : > { %512 = vst.msk [vmem:[#allocation2 + $0x14] sm:$0xf] %vm506_vm2, %v495_v41 }
  0xbb   : > { %v472_v42 = vpop.f32.mrf.mxu2  ;;  %v482_v43 = vpop.f32.mrf.mxu3 }
  0xbc   : > { %v499_v44 = vpack.c.bf16 %v472_v42, %v472_v42  ;;  %v503_v45 = vpack.c.bf16 %v482_v43, %v482_v43  ;;  %v455_v46 = vpop.f32.mrf.mxu0  ;;  %v465_v47 = vpop.f32.mrf.mxu1 }
  0xbd   : > { %v492_v48 = vpack.c.bf16 %v455_v46, %v455_v46  ;;  %v496_v49 = vpack.c.bf16 %v465_v47, %v465_v47 }
  0xbe   : > { %516 = vst.msk [vmem:[#allocation2 + $0x24] sm:$0xf] %vm506_vm2, %v499_v44 }
  0xbf   : > { %520 = vst.msk [vmem:[#allocation2 + $0x34] sm:$0xf] %vm506_vm2, %v503_v45 }
  0xc0   : > { %509 = vst.msk [vmem:[#allocation2 + $0x8] sm:$0xf] %vm506_vm2, %v492_v48 }
  0xc1   : > { %513 = vst.msk [vmem:[#allocation2 + $0x18] sm:$0xf] %vm506_vm2, %v496_v49 }
  0xc3   : > { %v475_v50 = vpop.f32.mrf.mxu2  ;;  %v485_v51 = vpop.f32.mrf.mxu3 }
  0xc4   : > { %v500_v52 = vpack.c.bf16 %v475_v50, %v475_v50  ;;  %v504_v53 = vpack.c.bf16 %v485_v51, %v485_v51  ;;  %v457_v54 = vpop.f32.mrf.mxu0  ;;  %v467_v55 = vpop.f32.mrf.mxu1 }
  0xc5   : > { %v493_v56 = vpack.c.bf16 %v457_v54, %v457_v54  ;;  %v497_v57 = vpack.c.bf16 %v467_v55, %v467_v55 }
  0xc6   : > { %517 = vst.msk [vmem:[#allocation2 + $0x28] sm:$0xf] %vm506_vm2, %v500_v52 }
  0xc7   : > { %521 = vst.msk [vmem:[#allocation2 + $0x38] sm:$0xf] %vm506_vm2, %v504_v53 }
  0xc8   : > { %510 = vst.msk [vmem:[#allocation2 + $0xc] sm:$0xf] %vm506_vm2, %v493_v56 }
  0xc9   : > { %514 = vst.msk [vmem:[#allocation2 + $0x1c] sm:$0xf] %vm506_vm2, %v497_v57 }
  0xcb   : > { %v477_v58 = vpop.f32.mrf.mxu2  ;;  %v487_v59 = vpop.f32.mrf.mxu3 }
  0xcc   : > { %v501_v60 = vpack.c.bf16 %v477_v58, %v477_v58  ;;  %v505_v61 = vpack.c.bf16 %v487_v59, %v487_v59 }
  0xce   : > { %518 = vst.msk [vmem:[#allocation2 + $0x2c] sm:$0xf] %vm506_vm2, %v501_v60 }
  0xcf   : > { %522 = vst.msk [vmem:[#allocation2 + $0x3c] sm:$0xf] %vm506_vm2, %v505_v61 }
  0xd0 PF: > { %v2096_v62 = vld [vmem:[%s3242_s3 + $0x18] sm:$0xff]  ;;  %v2095_v63 = vld [vmem:[%s3242_s3 + $0x10] sm:$0xff]  ;;  %v2094_v0 = vld [vmem:[%s3242_s3 + $0x8] sm:$0xff]  ;;  %vm628_vm3 = vcmask 523264   ;;  %vm1272_vm4 = vcmask 7168   ;;  %p2086_p11 = scmp.ne.s32.totalorder %s2325_s21, 1 }
  0xd1   : > { %657 = vmatpush.bf16.msra.mxu0 %v2096_v62  ;;  %2121 = vmatpush.bf16.msra.mxu1 %v2096_v62  ;;  %v2093_v1 = vld [vmem:[%s3242_s3] sm:$0xff]  ;;  %v573_v3 = vld [vmem:[%s2453_s10 + $0x8] sm:$0xff]  ;;  %v574_v5 = vld [vmem:[%s2453_s10 + $0x10] sm:$0xff] }
  0xd2   : > { %v572_v2 = vld [vmem:[%s2453_s10] sm:$0xff]  ;;  %v575_v6 = vld [vmem:[%s2453_s10 + $0x18] sm:$0xff]  ;;  %v577_v9 = vld [vmem:[%s2453_s10 + $0x28] sm:$0xff] }
  0xd3   : > { %v2575_v4 = vpack.c.bf16 %v573_v3, %v572_v2  ;;  %v2581_v7 = vpack.c.bf16 %v575_v6, %v574_v5  ;;  %v576_v8 = vld [vmem:[%s2453_s10 + $0x20] sm:$0xff]  ;;  %v586_v11 = vld [vmem:[%s2453_s10 + $0x70] sm:$0xff]  ;;  %v587_v12 = vld [vmem:[%s2453_s10 + $0x78] sm:$0xff] }
  0xd4   : > { %v2587_v10 = vpack.c.bf16 %v577_v9, %v576_v8  ;;  %v2593_v13 = vpack.c.bf16 %v587_v12, %v586_v11  ;;  %v578_v14 = vld [vmem:[%s2453_s10 + $0x30] sm:$0xff]  ;;  %v579_v15 = vld [vmem:[%s2453_s10 + $0x38] sm:$0xff]  ;;  %v580_v17 = vld [vmem:[%s2453_s10 + $0x40] sm:$0xff] }
  0xd5   : > { %658 = vmatpush.bf16.msra.mxu0 %v2095_v63  ;;  %2122 = vmatpush.bf16.msra.mxu1 %v2095_v63  ;;  %v2599_v16 = vpack.c.bf16 %v579_v15, %v578_v14  ;;  %v581_v18 = vld [vmem:[%s2453_s10 + $0x48] sm:$0xff]  ;;  %v582_v20 = vld [vmem:[%s2453_s10 + $0x50] sm:$0xff]  ;;  %v583_v21 = vld [vmem:[%s2453_s10 + $0x58] sm:$0xff] }
  0xd6   : > { %v2605_v19 = vpack.c.bf16 %v581_v18, %v580_v17  ;;  %v2611_v22 = vpack.c.bf16 %v583_v21, %v582_v20  ;;  %v584_v23 = vld [vmem:[%s2453_s10 + $0x60] sm:$0xff]  ;;  %v585_v24 = vld [vmem:[%s2453_s10 + $0x68] sm:$0xff]  ;;  %v2103_v59 = vld [vmem:[#allocation2 + $0x10] sm:$0xff] }
  0xd7   : > { %v2617_v25 = vpack.c.bf16 %v585_v24, %v584_v23  ;;  %v2101_v58 = vld [vmem:[#allocation2] sm:$0xff]  ;;  %v2102_v60 = vld [vmem:[#allocation2 + $0x8] sm:$0xff]  ;;  %v2104_v61 = vld [vmem:[#allocation2 + $0x18] sm:$0xff] }
  0xd8   : > { %v2105_v62 = vld [vmem:[#allocation2 + $0x20] sm:$0xff]  ;;  %v2100_v63 = vld [vmem:[%s3243_s4 + $0x18] sm:$0xff]  ;;  %v2106_v3 = vld [vmem:[#allocation2 + $0x28] sm:$0xff] }
  0xd9   : > { %659 = vmatpush.bf16.msra.mxu0 %v2094_v0  ;;  %2123 = vmatpush.bf16.msra.mxu1 %v2094_v0  ;;  %v2099_v0 = vld [vmem:[%s3243_s4 + $0x10] sm:$0xff]  ;;  %v2097_v2 = vld [vmem:[%s3243_s4] sm:$0xff] }
  0xda   : > { %v2107_v5 = vld [vmem:[#allocation2 + $0x30] sm:$0xff] }
  0xdd   : > { %660 = vmatpush.bf16.msra.mxu0 %v2093_v1  ;;  %2124 = vmatpush.bf16.msra.mxu1 %v2093_v1  ;;  %v2098_v1 = vld [vmem:[%s3243_s4 + $0x8] sm:$0xff] }
  0xe0   : > { %2014 = vmatmul.msk.bf16.vlgmr.msra.gmra.mxu0 %vm628_vm3, %v2575_v4  ;;  %2021 = vmatmul.msk.bf16.vlgmr.msra.gmra.mxu1 %vm628_vm3, %v2593_v13 }
  0xe1   : > { %746 = vmatpush.bf16.msrb.mxu1 %v2100_v63 }
  0xe5   : > { %747 = vmatpush.bf16.msrb.mxu1 %v2099_v0 }
  0xe9   : > { %748 = vmatpush.bf16.msrb.mxu1 %v2098_v1 }
  0xed   : > { %749 = vmatpush.bf16.msrb.mxu1 %v2097_v2 }
  0xf0   : > { %2015 = vmatmul.msk.bf16.gmra.mxu0 %vm628_vm3, %v2581_v7  ;;  %2038 = vmatmul.msk.bf16.vlgmr.msrb.gmra.mxu1 %vm628_vm3, %v2575_v4 }
 0x100   : > { %2016 = vmatmul.msk.bf16.gmra.mxu0 %vm628_vm3, %v2587_v10  ;;  %2039 = vmatmul.msk.bf16.gmra.mxu1 %vm628_vm3, %v2581_v7 }
 0x110   : > { %2017 = vmatmul.msk.bf16.gmra.mxu0 %vm628_vm3, %v2599_v16  ;;  %2040 = vmatmul.msk.bf16.gmra.mxu1 %vm628_vm3, %v2587_v10 }
 0x120   : > { %2018 = vmatmul.msk.bf16.gmra.mxu0 %vm628_vm3, %v2605_v19  ;;  %2041 = vmatmul.msk.bf16.gmra.mxu1 %vm628_vm3, %v2599_v16 }
 0x130   : > { %2019 = vmatmul.msk.bf16.gmra.mxu0 %vm628_vm3, %v2611_v22  ;;  %2042 = vmatmul.msk.bf16.gmra.mxu1 %vm628_vm3, %v2605_v19 }
 0x140   : > { %2020 = vmatmul.msk.bf16.gmra.mxu0 %vm628_vm3, %v2617_v25  ;;  %2043 = vmatmul.msk.bf16.gmra.mxu1 %vm628_vm3, %v2611_v22  ;;  %v2353_v22 = vmov 0  }
 0x141   : > { %2193 = vset.pattern.permute.xlu0 %v2353_v22  ;;  %2194 = vset.pattern.permute.xlu2 %v2353_v22 }
 0x142   : > { %2195 = vset.pattern.permute.xlu1 %v2353_v22 }
 0x150   : > { %2044 = vmatmul.msk.bf16.gmra.mxu1 %vm628_vm3, %v2617_v25 }
 0x15d   : > { %v662_v26 = vpop.f32.mrf.mxu0  ;;  %v697_v35 = vpop.f32.mrf.mxu1 }
 0x160   : > { %2045 = vmatmul.msk.bf16.gmra.mxu1 %vm628_vm3, %v2593_v13 }
 0x165   : > { %v664_v27 = vpop.f32.mrf.mxu0  ;;  %v699_v37 = vpop.f32.mrf.mxu1 }
 0x166   : > { %v702_v28 = vpack.c.bf16 %v664_v27, %v662_v26  ;;  %v709_v38 = vpack.c.bf16 %v699_v37, %v697_v35  ;;  %v2718_v27 = vld [vmem:[#allocation3] sm:$0xff]  ;;  %v2734_v35 = vld [vmem:[#allocation3 + $0x8] sm:$0xff] }
 0x168   : > { %v901_v39 = vsel %vm628_vm3, %v709_v38, 0  ;;  %v880_v57 = vsel %vm628_vm3, %v702_v28, 0 }
 0x169   : > { %903 = vmatpush.bf16.xpose.msrb.mxu0 %v901_v39  ;;  %2125 = vmatpush.bf16.xpose.msra.mxu2 %v901_v39 }
 0x16d   : > { %v667_v29 = vpop.f32.mrf.mxu0  ;;  %v2693_v16 = vpop.f32.mrf.mxu1 }
 0x175   : > { %v669_v30 = vpop.f32.mrf.mxu0  ;;  %v2698_v18 = vpop.f32.mrf.mxu1 }
 0x176   : > { %v703_v31 = vpack.c.bf16 %v669_v30, %v667_v29  ;;  %v791_v19 = vpack.c.bf16 %v2698_v18, %v2693_v16 }
 0x178   : > { %v883_v56 = vsel %vm628_vm3, %v703_v31, 0 }
 0x17d   : > { %v672_v32 = vpop.f32.mrf.mxu0  ;;  %v2708_v21 = vpop.f32.mrf.mxu1 }
 0x185   : > { %v674_v33 = vpop.f32.mrf.mxu0  ;;  %v2710_v23 = vpop.f32.mrf.mxu1 }
 0x186   : > { %v704_v34 = vpack.c.bf16 %v674_v33, %v672_v32  ;;  %v792_v24 = vpack.c.bf16 %v2710_v23, %v2708_v21  ;;  %v2732_v33 = vld [vmem:[#allocation3 + $0x20] sm:$0xff] }
 0x188   : > { %v886_v55 = vsel %vm628_vm3, %v704_v34, 0 }
 0x18d   : > { %v677_v36 = vpop.f32.mrf.mxu0  ;;  %v2714_v25 = vpop.f32.mrf.mxu1 }
 0x195   : > { %v679_v40 = vpop.f32.mrf.mxu0  ;;  %v2716_v26 = vpop.f32.mrf.mxu1 }
 0x196   : > { %v705_v41 = vpack.c.bf16 %v679_v40, %v677_v36  ;;  %v793_v28 = vpack.c.bf16 %v2716_v26, %v2714_v25 }
 0x198   : > { %v889_v54 = vsel %vm628_vm3, %v705_v41, 0 }
 0x19d   : > { %v682_v42 = vpop.f32.mrf.mxu0  ;;  %v2725_v31 = vpop.f32.mrf.mxu1 }
 0x1a5   : > { %v684_v43 = vpop.f32.mrf.mxu0  ;;  %v2747_v40 = vpop.f32.mrf.mxu1 }
 0x1a6   : > { %v706_v52 = vpack.c.bf16 %v684_v43, %v682_v42  ;;  %v2754_v42 = vld [vmem:[#allocation3 + $0x28] sm:$0xff]  ;;  %v794_v43 = vpack.c.bf16 %v2747_v40, %v2725_v31 }
 0x1a8   : > { %v892_v53 = vsel %vm628_vm3, %v706_v52, 0 }
 0x1ad   : > { %v687_v44 = vpop.f32.mrf.mxu0 }
 0x1b5   : > { %v689_v45 = vpop.f32.mrf.mxu0 }
 0x1b6   : > { %v707_v50 = vpack.c.bf16 %v689_v45, %v687_v44  ;;  %v2108_v44 = vld [vmem:[#allocation2 + $0x38] sm:$0xff] }
 0x1b8   : > { %v895_v51 = vsel %vm628_vm3, %v707_v50, 0 }
 0x1bd   : > { %v692_v46 = vpop.f32.mrf.mxu0 }
 0x1c5   : > { %v694_v47 = vpop.f32.mrf.mxu0 }
 0x1c6   : > { %v708_v48 = vpack.c.bf16 %v694_v47, %v692_v46  ;;  %v2758_v46 = vld [vmem:[#allocation3 + $0x10] sm:$0xff] }
 0x1c8   : > { %v898_v49 = vsel %vm628_vm3, %v708_v48, 0 }
 0x1c9   : > { %904 = vmatpush.bf16.xpose.msrb.mxu0 %v898_v49  ;;  %2126 = vmatpush.bf16.xpose.msra.mxu2 %v898_v49  ;;  %v2834_v49 = vld [vmem:[#allocation3 + $0x58] sm:$0xff] }
 0x1d1   : > { %905 = vmatpush.bf16.xpose.msrb.mxu0 %v895_v51  ;;  %2127 = vmatpush.bf16.xpose.msra.mxu2 %v895_v51  ;;  %v771_v51 = vpop.f32.mrf.mxu1 }
 0x1d9   : > { %906 = vmatpush.bf16.xpose.msrb.mxu0 %v892_v53  ;;  %2128 = vmatpush.bf16.xpose.msra.mxu2 %v892_v53  ;;  %v2776_v53 = vld [vmem:[#allocation3 + $0x30] sm:$0xff] }
 0x1e1   : > { %907 = vmatpush.bf16.xpose.msrb.mxu0 %v889_v54  ;;  %2129 = vmatpush.bf16.xpose.msra.mxu2 %v889_v54 }
 0x1e9   : > { %908 = vmatpush.bf16.xpose.msrb.mxu0 %v886_v55  ;;  %2130 = vmatpush.bf16.xpose.msra.mxu2 %v886_v55  ;;  %v2778_v55 = vld [vmem:[#allocation3 + $0x18] sm:$0xff] }
 0x1f1   : > { %909 = vmatpush.bf16.xpose.msrb.mxu0 %v883_v56  ;;  %2131 = vmatpush.bf16.xpose.msra.mxu2 %v883_v56 }
 0x1f9   : > { %910 = vmatpush.bf16.xpose.msrb.mxu0 %v880_v57  ;;  %2132 = vmatpush.bf16.xpose.msra.mxu2 %v880_v57 }
 0x200   : > { %2078 = vmatmul.msk.bf16.vlgmr.msrb.gmra.mxu0 %vm628_vm3, %v2101_v58  ;;  %2080 = vmatmul.msk.bf16.vlgmr.msra.gmra.mxu2 %vm628_vm3, %v2103_v59 }
 0x210   : > { %2079 = vmatmul.msk.bf16.gmra.mxu0 %vm628_vm3, %v2102_v60  ;;  %2081 = vmatmul.msk.bf16.gmra.mxu2 %vm628_vm3, %v2104_v61  ;;  %v773_v60 = vpop.f32.mrf.mxu1 }
 0x211   : > { %v795_v38 = vpack.c.bf16 %v773_v60, %v771_v51 }
 0x218   : > { %v776_v2 = vpop.f32.mrf.mxu1 }
 0x220   : > { %2082 = vmatmul.msk.bf16.gmra.mxu2 %vm628_vm3, %v2105_v62  ;;  %v2796_v62 = vld [vmem:[#allocation3 + $0x38] sm:$0xff] }
 0x230   : > { %2083 = vmatmul.msk.bf16.gmra.mxu2 %vm628_vm3, %v2106_v3  ;;  %v2806_v3 = vld [vmem:[#allocation3 + $0x40] sm:$0xff] }
 0x240   : > { %2084 = vmatmul.msk.bf16.gmra.mxu2 %vm628_vm3, %v2107_v5 }
 0x250   : > { %2085 = vmatmul.msk.bf16.gmra.mxu2 %vm628_vm3, %v2108_v44  ;;  %v2817_v44 = vld [vmem:[#allocation3 + $0x50] sm:$0xff] }
 0x27d   : > { %v2658_v6 = vpop.f32.mrf.mxu0 }
 0x27e   : > { %968 = vmax.xlane.f32.xlu0 %v2658_v6 }
 0x283   : > { %v2663_v4 = vpop.f32.mrf.mxu2 }
 0x284   : > { %976 = vmax.xlane.f32.xlu2 %v2663_v4 }
 0x285   : > { %v2666_v7 = vpop.f32.mrf.mxu0 }
 0x286   : > { %970 = vmax.xlane.f32.xlu0 %v2666_v7 }
 0x28b   : > { %v2669_v8 = vpop.f32.mrf.mxu2 }
 0x28c   : > { %978 = vmax.xlane.f32.xlu2 %v2669_v8 }
 0x28d   : > { %v2672_v9 = vpop.f32.mrf.mxu0 }
 0x28e   : > { %972 = vmax.xlane.f32.xlu1 %v2672_v9 }
 0x293   : > { %v2677_v10 = vpop.f32.mrf.mxu2 }
 0x294   : > { %980 = vmax.xlane.f32.xlu2 %v2677_v10 }
 0x295   : > { %v2680_v11 = vpop.f32.mrf.mxu0 }
 0x296   : > { %974 = vmax.xlane.f32.xlu1 %v2680_v11 }
 0x29b   : > { %v2683_v12 = vpop.f32.mrf.mxu2 }
 0x29c   : > { %982 = vmax.xlane.f32.xlu2 %v2683_v12 }
 0x2a3   : > { %v2688_v14 = vpop.f32.mrf.mxu2 }
 0x2a4   : > { %984 = vmax.xlane.f32.xlu1 %v2688_v14 }
 0x2ab   : > { %v2691_v15 = vpop.f32.mrf.mxu2 }
 0x2b3   : > { %v2695_v17 = vpop.f32.mrf.mxu2 }
 0x2b4   : > { %988 = vmax.xlane.f32.xlu2 %v2695_v17 }
 0x2bb   : > { %v2702_v20 = vpop.f32.mrf.mxu2 }
 0x2bc   : > { %990 = vmax.xlane.f32.xlu1 %v2702_v20 }
 0x2c3   : > { %v2705_v13 = vpop.f32.mrf.mxu2 }
 0x2c4   : > { %992 = vmax.xlane.f32.xlu2 %v2705_v13 }
 0x2f1   : > { %v969_v29 = vpop.xlane.xlu0 %968 }
 0x2f2   : > { %v2723_v30 = vmax.f32 %v2718_v27, %v969_v29 }
 0x2f4   : > { %1490 = vst.msk [vmem:[#allocation3] sm:$0xff] %vm1272_vm4, %v2723_v30  ;;  %1066 = vperm.xlu0 %2193, %v2723_v30  }
 0x2f7   : > { %v977_v34 = vpop.xlane.xlu2 %976 }
 0x2f8   : > { %v2737_v36 = vmax.f32 %v2732_v33, %v977_v34  ;;  %v778_v34 = vpop.f32.mrf.mxu1 }
 0x2f9   : > { %v971_v37 = vpop.xlane.xlu0 %970  ;;  %v796_v29 = vpack.c.bf16 %v778_v34, %v776_v2 }
 0x2fa   : > { %1494 = vst.msk [vmem:[#allocation3 + $0x20] sm:$0xff] %vm1272_vm4, %v2737_v36  ;;  %v2744_v39 = vmax.f32 %v2734_v35, %v971_v37  ;;  %1086 = vperm.xlu2 %2194, %v2737_v36  }
 0x2fc   : > { %v1017_v41 = vsub.f32 %v2734_v35, %v2744_v39  ;;  %1491 = vst.msk [vmem:[#allocation3 + $0x8] sm:$0xff] %vm1272_vm4, %v2744_v39  ;;  %1071 = vperm.xlu1 %2195, %v2744_v39   ;;  %v3251_v35 = vsub.f32 %v2732_v33, %v2737_v36 }
 0x2fe   : > { %v1040_v39 = vmul.f32 1.442695, %v3251_v35 }
 0x2ff   : > { %v979_v45 = vpop.xlane.xlu2 %978 }
 0x300   : > { %v2761_v47 = vmax.f32 %v2754_v42, %v979_v45  ;;  %v781_v37 = vpop.f32.mrf.mxu1 }
 0x301   : > { %v973_v48 = vpop.xlane.xlu1 %972 }
 0x302   : > { %1495 = vst.msk [vmem:[#allocation3 + $0x28] sm:$0xff] %vm1272_vm4, %v2761_v47  ;;  %v2769_v50 = vmax.f32 %v2758_v46, %v973_v48 }
 0x304   : > { %1492 = vst.msk [vmem:[#allocation3 + $0x10] sm:$0xff] %vm1272_vm4, %v2769_v50  ;;  %1076 = vperm.xlu2 %2194, %v2769_v50  }
 0x307   : > { %v981_v54 = vpop.xlane.xlu2 %980 }
 0x308   : > { %v2781_v56 = vmax.f32 %v2776_v53, %v981_v54  ;;  %v783_v54 = vpop.f32.mrf.mxu1 }
 0x309   : > { %v975_v57 = vpop.xlane.xlu1 %974  ;;  %v797_v1 = vpack.c.bf16 %v783_v54, %v781_v37  ;;  %v2878_v54 = vld [vmem:[#allocation3 + $0x48] sm:$0xff] }
 0x30a   : > { %1496 = vst.msk [vmem:[#allocation3 + $0x30] sm:$0xff] %vm1272_vm4, %v2781_v56  ;;  %v2788_v59 = vmax.f32 %v2778_v55, %v975_v57 }
 0x30c   : > { %1493 = vst.msk [vmem:[#allocation3 + $0x18] sm:$0xff] %vm1272_vm4, %v2788_v59  ;;  %1091 = vperm.xlu2 %2194, %v2761_v47   ;;  %1081 = vperm.xlu1 %2195, %v2788_v59  }
 0x30f   : > { %v983_v63 = vpop.xlane.xlu2 %982 }
 0x310   : > { %v2799_v0 = vmax.f32 %v2796_v62, %v983_v63  ;;  %v786_v57 = vpop.f32.mrf.mxu1  ;;  %v2825_v63 = vld [vmem:[#allocation3 + $0x60] sm:$0xff] }
 0x312   : > { %1497 = vst.msk [vmem:[#allocation3 + $0x38] sm:$0xff] %vm1272_vm4, %v2799_v0  ;;  %v3253_v33 = vsub.f32 %v2796_v62, %v2799_v0 }
 0x314   : > { %1101 = vperm.xlu1 %2195, %v2799_v0   ;;  %v1046_v36 = vmul.f32 1.442695, %v3253_v33 }
 0x317   : > { %v985_v5 = vpop.xlane.xlu1 %984 }
 0x318   : > { %v2809_v22 = vmax.f32 %v2806_v3, %v985_v5 }
 0x31a   : > { %1498 = vst.msk [vmem:[#allocation3 + $0x40] sm:$0xff] %vm1272_vm4, %v2809_v22  ;;  %1106 = vperm.xlu2 %2194, %v2809_v22  }
 0x31e   : > { %986 = vmax.xlane.f32.xlu0 %v2691_v15 }
 0x327   : > { %v989_v45 = vpop.xlane.xlu2 %988 }
 0x328   : > { %v2820_v48 = vmax.f32 %v2817_v44, %v989_v45  ;;  %v788_v45 = vpop.f32.mrf.mxu1 }
 0x329   : > { %v798_v52 = vpack.c.bf16 %v788_v45, %v786_v57 }
 0x32a   : > { %1500 = vst.msk [vmem:[#allocation3 + $0x50] sm:$0xff] %vm1272_vm4, %v2820_v48 }
 0x32b   : > { %1409 = vmatpush.bf16.msra.mxu3 %v798_v52 }
 0x32f   : > { %1410 = vmatpush.bf16.msra.mxu3 %v797_v1  ;;  %v991_v32 = vpop.xlane.xlu1 %990 }
 0x332   : > { %1096 = vperm.xlu0 %2193, %v2781_v56  }
 0x333   : > { %1411 = vmatpush.bf16.msra.mxu3 %v796_v29 }
 0x337   : > { %v993_v5 = vpop.xlane.xlu2 %992  ;;  %1412 = vmatpush.bf16.msra.mxu3 %v795_v38  ;;  %v2850_v38 = vpop.f32.mrf.mxu2 }
 0x338   : > { %v2828_v58 = vmax.f32 %v2825_v63, %v993_v5  ;;  %v2837_v5 = vmax.f32 %v2834_v49, %v991_v32 }
 0x33a   : > { %v1028_v61 = vsub.f32 %v2825_v63, %v2828_v58  ;;  %1502 = vst.msk [vmem:[#allocation3 + $0x60] sm:$0xff] %vm1272_vm4, %v2828_v58 }
 0x33b   : > { %1413 = vmatpush.bf16.msra.mxu3 %v794_v43  ;;  %1501 = vst.msk [vmem:[#allocation3 + $0x58] sm:$0xff] %vm1272_vm4, %v2837_v5 }
 0x33f   : > { %1414 = vmatpush.bf16.msra.mxu3 %v793_v28  ;;  %v2873_v29 = vpop.f32.mrf.mxu2 }
 0x343   : > { %1415 = vmatpush.bf16.msra.mxu3 %v792_v24 }
 0x347   : > { %1416 = vmatpush.bf16.msra.mxu3 %v791_v19  ;;  %v2880_v45 = vpop.f32.mrf.mxu2 }
 0x348   : > { %998 = vmax.xlane.f32.xlu2 %v2880_v45 }
 0x354   : > { %v1087_v51 = vpop.permute.xlu2 %1086 }
 0x355   : > { %v1148_v34 = vsub.f32 %v2663_v4, %v1087_v51 }
 0x35c   : > { %994 = vmax.xlane.f32.xlu0 %v2850_v38 }
 0x35e   : > { %v1077_v23 = vpop.permute.xlu2 %1076 }
 0x35f   : > { %v1146_v18 = vsub.f32 %v2672_v9, %v1077_v23 }
 0x361   : > { %v1164_v19 = vmul.f32 1.442695, %v1146_v18 }
 0x366   : > { %v1067_v31 = vpop.permute.xlu0 %1066  ;;  %v1092_v52 = vpop.permute.xlu2 %1091 }
 0x367   : > { %v1144_v32 = vsub.f32 %v2658_v6, %v1067_v31  ;;  %v1149_v2 = vsub.f32 %v2669_v8, %v1092_v52  ;;  %v3249_v52 = vsub.f32 %v2718_v27, %v2723_v30  ;;  %v3252_v27 = vsub.f32 %v2806_v3, %v2809_v22 }
 0x368   : > { %v1026_v3 = vsub.f32 %v2817_v44, %v2820_v48 }
 0x369   : > { %v1160_v40 = vmul.f32 1.442695, %v1144_v32  ;;  %v1170_v37 = vmul.f32 1.442695, %v1149_v2  ;;  %v1032_v2 = vmul.f32 1.442695, %v3249_v52 }
 0x36a   : > { %v1048_v30 = vmul.f32 1.442695, %v3252_v27 }
 0x36b   : > { %2196 = vpow2.f32 %v1160_v40 }
 0x36e   : > { %v1072_v43 = vpop.permute.xlu1 %1071 }
 0x36f   : > { %v1145_v25 = vsub.f32 %v2666_v7, %v1072_v43 }
 0x370   : > { %1116 = vperm.xlu0 %2193, %v2820_v48  }
 0x371   : > { %v1162_v21 = vmul.f32 1.442695, %v1145_v25  ;;  %v2859_v24 = vpop.eup %2196 }
 0x373   : > { %2198 = vpow2.f32 %v1162_v21 }
 0x374   : > { %2200 = vpow2.f32 %v1164_v19  ;;  %v1107_v44 = vpop.permute.xlu2 %1106 }
 0x378   : > { %1126 = vperm.xlu0 %2193, %v2828_v58  }
 0x379   : > { %v2862_v16 = vpop.eup %2198 }
 0x37a   : > { %v1401_v6 = vpack.c.bf16 %v2862_v16, %v2859_v24  ;;  %v2868_v60 = vpop.eup %2200 }
 0x37c   : > { %1417 = vmatmul.bf16.vlgmr.msra.gmra.mxu3 %v1401_v6 }
 0x37e   : > { %v1082_v7 = vpop.permute.xlu1 %1081 }
 0x37f   : > { %v1147_v26 = vsub.f32 %v2680_v11, %v1082_v7  ;;  %v1168_v11 = vmul.f32 1.442695, %v1148_v34 }
 0x381   : > { %v1166_v28 = vmul.f32 1.442695, %v1147_v26  ;;  %v965_v26 = vld [vmem:[#allocation3 + $0x68] sm:$0xff] }
 0x383   : > { %2202 = vpow2.f32 %v1166_v28 }
 0x384   : > { %2204 = vpow2.f32 %v1170_v37 }
 0x385   : > { %2206 = vpow2.f32 %v1168_v11 }
 0x386   : > { %v1102_v43 = vpop.permute.xlu1 %1101 }
 0x387   : > { %v1151_v51 = vsub.f32 %v2683_v12, %v1102_v43  ;;  %v1034_v12 = vmul.f32 1.442695, %v1017_v41 }
 0x389   : > { %v2870_v1 = vpop.eup %2202  ;;  %v1174_v25 = vmul.f32 1.442695, %v1151_v51  ;;  %v1152_v51 = vsub.f32 %v2688_v14, %v1107_v44 }
 0x38a   : > { %v1402_v9 = vpack.c.bf16 %v2870_v1, %v2868_v60  ;;  %v2891_v4 = vpop.eup %2204 }
 0x38b   : > { %v2893_v32 = vpop.eup %2206  ;;  %2208 = vpow2.f32 %v1174_v25  ;;  %v2958_v25 = vld [vmem:[#allocation3 + $0x78] sm:$0xff] }
 0x38c   : > { %1422 = vmatmul.bf16.gmra.mxu3 %v1402_v9  ;;  %v1403_v40 = vpack.c.bf16 %v2891_v4, %v2893_v32  ;;  %v3250_v9 = vsub.f32 %v2754_v42, %v2761_v47  ;;  %v1027_v47 = vsub.f32 %v2834_v49, %v2837_v5 }
 0x38e   : > { %v1042_v34 = vmul.f32 1.442695, %v3250_v9 }
 0x391   : > { %v987_v57 = vpop.xlane.xlu0 %986  ;;  %v2899_v6 = vpop.eup %2208 }
 0x392   : > { %v2883_v31 = vmax.f32 %v2878_v54, %v987_v57  ;;  %v1054_v57 = vmul.f32 1.442695, %v1027_v47  ;;  %v1290_v47 = vld [vmem:[#allocation5 + $0x8] sm:$0xff] }
 0x394   : > { %v1025_v8 = vsub.f32 %v2878_v54, %v2883_v31  ;;  %1499 = vst.msk [vmem:[#allocation3 + $0x48] sm:$0xff] %vm1272_vm4, %v2883_v31  ;;  %1111 = vperm.xlu1 %2195, %v2883_v31  }
 0x39c   : > { %1427 = vmatmul.bf16.gmra.mxu3 %v1403_v40  ;;  %v1052_v40 = vmul.f32 1.442695, %v1026_v3 }
 0x3a4   : > { %v1097_v21 = vpop.permute.xlu0 %1096 }
 0x3a5   : > { %v1150_v23 = vsub.f32 %v2677_v10, %v1097_v21 }
 0x3a7   : > { %v1172_v18 = vmul.f32 1.442695, %v1150_v23  ;;  %v1176_v23 = vmul.f32 1.442695, %v1152_v51 }
 0x3a9   : > { %2210 = vpow2.f32 %v1172_v18 }
 0x3aa   : > { %2212 = vpow2.f32 %v1034_v12 }
 0x3ab   : > { %2214 = vpow2.f32 %v1032_v2 }
 0x3ac   : > { %2216 = vpow2.f32 %v1042_v34 }
 0x3ad   : > { %2218 = vpow2.f32 %v1040_v39  ;;  %v966_v39 = vld [vmem:[#allocation3 + $0x70] sm:$0xff] }
 0x3ae   : > { %2220 = vpow2.f32 %v1048_v30 }
 0x3af   : > { %v2901_v19 = vpop.eup %2210  ;;  %2222 = vpow2.f32 %v1046_v36 }
 0x3b0   : > { %v1404_v7 = vpack.c.bf16 %v2899_v6, %v2901_v19  ;;  %v2917_v37 = vpop.eup %2212  ;;  %2224 = vpow2.f32 %v1054_v57 }
 0x3b1   : > { %v2923_v41 = vpop.eup %2214  ;;  %2226 = vpow2.f32 %v1052_v40 }
 0x3b2   : > { %1432 = vmatmul.bf16.gmra.mxu3 %v1404_v7  ;;  %v2929_v42 = vpop.eup %2216 }
 0x3b3   : > { %v2937_v11 = vpop.eup %2218 }
 0x3b4   : > { %v2942_v22 = vpop.eup %2220 }
 0x3b5   : > { %v2945_v49 = vpop.eup %2222 }
 0x3b6   : > { %v2948_v0 = vpop.eup %2224 }
 0x3b7   : > { %v2951_v43 = vpop.eup %2226 }
 0x3bb   : > { %v999_v21 = vpop.xlane.xlu2 %998 }
 0x3bc   : > { %v2961_v7 = vmax.f32 %v2958_v25, %v999_v21 }
 0x3be   : > { %996 = vmax.xlane.f32.xlu1 %v2873_v29  ;;  %v1031_v12 = vsub.f32 %v2958_v25, %v2961_v7  ;;  %1505 = vst.msk [vmem:[#allocation3 + $0x78] sm:$0xff] %vm1272_vm4, %v2961_v7 }
 0x3c0   : > { %v1062_v58 = vmul.f32 1.442695, %v1031_v12 }
 0x3cf   : > { %v995_v28 = vpop.xlane.xlu0 %994 }
 0x3d0   : > { %v1013_v10 = vmax.f32 %v965_v26, %v995_v28 }
 0x3d2   : > { %1503 = vst.msk [vmem:[#allocation3 + $0x68] sm:$0xff] %vm1272_vm4, %v1013_v10  ;;  %1131 = vperm.xlu2 %2194, %v1013_v10   ;;  %v1029_v62 = vsub.f32 %v965_v26, %v1013_v10 }
 0x3d7   : > { %1121 = vperm.xlu1 %2195, %v2837_v5   ;;  %v1058_v5 = vmul.f32 1.442695, %v1029_v62  ;;  %v3254_v62 = vsub.f32 %v2758_v46, %v2769_v50  ;;  %v3255_v46 = vsub.f32 %v2778_v55, %v2788_v59 }
 0x3d9   : > { %2228 = vpow2.f32 %v1058_v5  ;;  %v1036_v5 = vmul.f32 1.442695, %v3254_v62  ;;  %v1038_v50 = vmul.f32 1.442695, %v3255_v46  ;;  %v1056_v62 = vmul.f32 1.442695, %v1028_v61 }
 0x3da   : > { %1312 = vperm.xlu2 %2194, %v2917_v37   ;;  %2230 = vpow2.f32 %v1176_v23 }
 0x3df   : > { %1307 = vperm.xlu1 %2195, %v2923_v41   ;;  %v2954_v48 = vpop.eup %2228 }
 0x3e0   : > { %v2231_v10 = vpop.eup %2230 }
 0x3e2   : > { %1332 = vperm.xlu2 %2194, %v2929_v42  }
 0x3e7   : > { %1327 = vperm.xlu1 %2195, %v2937_v11  }
 0x3ea   : > { %1347 = vperm.xlu2 %2194, %v2942_v22  }
 0x3ef   : > { %1342 = vperm.xlu1 %2195, %v2945_v49  }
 0x3f2   : > { %1362 = vperm.xlu2 %2194, %v2948_v0  }
 0x3f7   : > { %1357 = vperm.xlu1 %2195, %v2951_v43  }
 0x3ff   : > { %1372 = vperm.xlu1 %2195, %v2954_v48   ;;  %v2968_v14 = vpop.f32.mrf.mxu3 }
 0x406   : > { %v1112_v18 = vpop.permute.xlu1 %1111 }
 0x407   : > { %v1153_v26 = vsub.f32 %v2691_v15, %v1112_v18  ;;  %v1420_v9 = vpop.f32.mrf.mxu3 }
 0x409   : > { %v1178_v28 = vmul.f32 1.442695, %v1153_v26 }
 0x40b   : > { %2232 = vpow2.f32 %v1178_v28 }
 0x40f   : > { %v2973_v34 = vpop.f32.mrf.mxu3 }
 0x411   : > { %v2970_v52 = vpop.eup %2232 }
 0x412   : > { %v1405_v2 = vpack.c.bf16 %v2970_v52, %v2231_v10 }
 0x414   : > { %1437 = vmatmul.bf16.gmra.mxu3 %v1405_v2  ;;  %v3256_v2 = vsub.f32 %v2776_v53, %v2781_v56 }
 0x417   : > { %v2976_v15 = vpop.f32.mrf.mxu3 }
 0x41f   : > { %v2981_v33 = vpop.f32.mrf.mxu3 }
 0x427   : > { %v1430_v23 = vpop.f32.mrf.mxu3 }
 0x429   : > { %1224 = vadd.xlane.f32.xlu1 %v2859_v24 }
 0x42c   : > { %v2978_v35 = vpop.permute.xlu2 %1131 }
 0x431   : > { %1234 = vadd.xlane.f32.xlu1 %v2891_v4  ;;  %v997_v27 = vpop.xlane.xlu1 %996  ;;  %v1294_v4 = vld [vmem:[#allocation5 + $0x28] sm:$0xff] }
 0x432   : > { %v1014_v30 = vmax.f32 %v966_v39, %v997_v27 }
 0x434   : > { %v1030_v36 = vsub.f32 %v966_v39, %v1014_v30  ;;  %1504 = vst.msk [vmem:[#allocation3 + $0x70] sm:$0xff] %vm1272_vm4, %v1014_v30  ;;  %v1313_v57 = vpop.permute.xlu2 %1312  ;;  %1136 = vperm.xlu0 %2193, %v1014_v30   ;;  %v1289_v30 = vld [vmem:[#allocation5] sm:$0xff] }
 0x435   : > { %v1386_v3 = vmul.f32 %v1313_v57, %v1290_v47 }
 0x436   : > { %v1060_v40 = vmul.f32 1.442695, %v1030_v36 }
 0x437   : > { %v1459_v24 = vadd.f32 %v1420_v9, %v1386_v3  ;;  %v1044_v9 = vmul.f32 1.442695, %v3256_v2  ;;  %v1157_v3 = vsub.f32 %v2850_v38, %v2978_v35  ;;  %v3025_v38 = vpop.f32.mrf.mxu3 }
 0x438   : > { %2234 = vpow2.f32 %v1060_v40 }
 0x439   : > { %1475 = vst.msk [vmem:[#allocation5 + $0x8] sm:$0xff] %vm628_vm3, %v1459_v24  ;;  %1230 = vadd.xlane.f32.xlu1 %v2870_v1  ;;  %2236 = vpow2.f32 %v1036_v5  ;;  %v1117_v1 = vpop.permute.xlu0 %1116  ;;  %v1186_v24 = vmul.f32 1.442695, %v1157_v3 }
 0x43a   : > { %2238 = vpow2.f32 %v1038_v50  ;;  %v1154_v28 = vsub.f32 %v2695_v17, %v1117_v1  ;;  %v1050_v17 = vmul.f32 1.442695, %v1025_v8  ;;  %v1293_v8 = vld [vmem:[#allocation5 + $0x20] sm:$0xff] }
 0x43b   : > { %2240 = vpow2.f32 %v1044_v9 }
 0x43c   : > { %v1333_v44 = vpop.permute.xlu2 %1332  ;;  %1141 = vperm.xlu0 %2193, %v2961_v7   ;;  %v1180_v39 = vmul.f32 1.442695, %v1154_v28  ;;  %v1297_v7 = vld [vmem:[#allocation5 + $0x40] sm:$0xff] }
 0x43d   : > { %v1390_v51 = vmul.f32 %v1333_v44, %v1294_v4 }
 0x43e   : > { %v2990_v21 = vpop.eup %2234  ;;  %2242 = vpow2.f32 %v1180_v39  ;;  %v1192_v39 = vld [vmem:[#allocation4] sm:$0xff] }
 0x43f   : > { %v1463_v18 = vadd.f32 %v1430_v23, %v1390_v51  ;;  %1377 = vperm.xlu2 %2194, %v2990_v21   ;;  %v2997_v26 = vpop.eup %2236 }
 0x440   : > { %v3005_v59 = vpop.eup %2238 }
 0x441   : > { %1479 = vst.msk [vmem:[#allocation5 + $0x28] sm:$0xff] %vm628_vm3, %v1463_v18  ;;  %1240 = vadd.xlane.f32.xlu1 %v2231_v10  ;;  %v3011_v53 = vpop.eup %2240  ;;  %v1435_v18 = vpop.f32.mrf.mxu3 }
 0x444   : > { %1317 = vperm.xlu0 %2193, %v2997_v26   ;;  %v3013_v36 = vpop.eup %2242  ;;  %v1348_v12 = vpop.permute.xlu2 %1347 }
 0x445   : > { %v1393_v2 = vmul.f32 %v1348_v12, %v1297_v7 }
 0x449   : > { %v1122_v27 = vpop.permute.xlu1 %1121 }
 0x44a   : > { %v1155_v55 = vsub.f32 %v2702_v20, %v1122_v27  ;;  %v1127_v20 = vpop.permute.xlu0 %1126  ;;  %v1208_v27 = vmul.f32 %v2923_v41, %v1192_v39 }
 0x44b   : > { %v1156_v31 = vsub.f32 %v2705_v13, %v1127_v20  ;;  %v1296_v13 = vld [vmem:[#allocation5 + $0x38] sm:$0xff] }
 0x44c   : > { %v1182_v10 = vmul.f32 1.442695, %v1155_v55  ;;  %1322 = vperm.xlu0 %2193, %v3005_v59  }
 0x44d   : > { %v1184_v35 = vmul.f32 1.442695, %v1156_v31 }
 0x44e   : > { %2244 = vpow2.f32 %v1182_v10 }
 0x44f   : > { %2246 = vpow2.f32 %v1050_v17 }
 0x450   : > { %2248 = vpow2.f32 %v1186_v24 }
 0x451   : > { %v1308_v47 = vpop.permute.xlu1 %1307  ;;  %2250 = vpow2.f32 %v1056_v62 }
 0x452   : > { %v1385_v56 = vmul.f32 %v1308_v47, %v1289_v30  ;;  %2252 = vpow2.f32 %v1184_v35  ;;  %v1292_v35 = vld [vmem:[#allocation5 + $0x18] sm:$0xff] }
 0x453   : > { %2254 = vpow2.f32 %v1062_v58  ;;  %v1203_v58 = vld [vmem:[#allocation4 + $0x58] sm:$0xff] }
 0x454   : > { %v2245_v57 = vpop.eup %2244  ;;  %v1458_v40 = vadd.f32 %v2968_v14, %v1385_v56  ;;  %1337 = vperm.xlu0 %2193, %v3011_v53   ;;  %v1195_v56 = vld [vmem:[#allocation4 + $0x18] sm:$0xff] }
 0x455   : > { %1246 = vadd.xlane.f32.xlu1 %v2245_v57  ;;  %v1406_v54 = vpack.c.bf16 %v2245_v57, %v3013_v36  ;;  %v3027_v4 = vpop.eup %2246  ;;  %v1211_v20 = vmul.f32 %v3005_v59, %v1195_v56 }
 0x456   : > { %1474 = vst.msk [vmem:[#allocation5] sm:$0xff] %vm628_vm3, %v1458_v40  ;;  %v2249_v63 = vpop.eup %2248 }
 0x457   : > { %1442 = vmatmul.bf16.gmra.mxu3 %v1406_v54  ;;  %v3035_v23 = vpop.eup %2250 }
 0x458   : > { %v2253_v46 = vpop.eup %2252 }
 0x459   : > { %v1328_v14 = vpop.permute.xlu1 %1327  ;;  %v3040_v1 = vpop.eup %2254 }
 0x45a   : > { %v1389_v5 = vmul.f32 %v1328_v14, %v1293_v8  ;;  %v1291_v8 = vld [vmem:[#allocation5 + $0x10] sm:$0xff] }
 0x45c   : > { %v1462_v44 = vadd.f32 %v2981_v33, %v1389_v5  ;;  %1352 = vperm.xlu0 %2193, %v3027_v4   ;;  %v1407_v33 = vpack.c.bf16 %v2249_v63, %v2253_v46 }
 0x45e   : > { %1478 = vst.msk [vmem:[#allocation5 + $0x20] sm:$0xff] %vm628_vm3, %v1462_v44 }
 0x461   : > { %v1343_v61 = vpop.permute.xlu1 %1342 }
 0x462   : > { %v1392_v51 = vmul.f32 %v1343_v61, %v1296_v13  ;;  %v1295_v13 = vld [vmem:[#allocation5 + $0x30] sm:$0xff] }
 0x464   : > { %v1465_v50 = vadd.f32 %v1435_v18, %v1392_v51  ;;  %1367 = vperm.xlu0 %2193, %v3035_v23   ;;  %v1219_v51 = vmul.f32 %v2948_v0, %v1203_v58  ;;  %v1194_v0 = vld [vmem:[#allocation4 + $0x10] sm:$0xff] }
 0x466   : > { %1481 = vst.msk [vmem:[#allocation5 + $0x38] sm:$0xff] %vm628_vm3, %v1465_v50  ;;  %v1363_v50 = vpop.permute.xlu2 %1362 }
 0x467   : > { %1447 = vmatmul.bf16.gmra.mxu3 %v1407_v33  ;;  %v1298_v33 = vld [vmem:[#allocation5 + $0x48] sm:$0xff] }
 0x468   : > { %1228 = vadd.xlane.f32.xlu2 %v2868_v60 }
 0x469   : > { %v3045_v25 = vpop.permute.xlu1 %1357 }
 0x46c   : > { %1382 = vperm.xlu0 %2193, %v3040_v1  }
 0x470   : > { %1236 = vadd.xlane.f32.xlu2 %v2901_v19 }
 0x471   : > { %v3047_v28 = vpop.permute.xlu1 %1372 }
 0x478   : > { %1242 = vadd.xlane.f32.xlu2 %v2970_v52  ;;  %v1197_v52 = vld [vmem:[#allocation4 + $0x28] sm:$0xff] }
 0x479   : > { %v1213_v10 = vmul.f32 %v2929_v42, %v1197_v52 }
 0x480   : > { %1248 = vadd.xlane.f32.xlu2 %v2253_v46 }
 0x496   : > { %1232 = vadd.xlane.f32.xlu0 %v2893_v32 }
 0x497   : > { %v1438_v9 = vpop.f32.mrf.mxu3 }
 0x498   : > { %v1466_v60 = vadd.f32 %v1438_v9, %v1393_v2 }
 0x499   : > { %v3072_v9 = vpop.permute.xlu2 %1377 }
 0x49a   : > { %1482 = vst.msk [vmem:[#allocation5 + $0x40] sm:$0xff] %vm628_vm3, %v1466_v60  ;;  %v1299_v60 = vld [vmem:[#allocation5 + $0x50] sm:$0xff] }
 0x49b   : > { %v1395_v39 = vmul.f32 %v3045_v25, %v1299_v60  ;;  %v1301_v25 = vld [vmem:[#allocation5 + $0x60] sm:$0xff] }
 0x49c   : > { %v1225_v19 = vpop.xlane.xlu1 %1224 }
 0x49d   : > { %v1256_v55 = vadd.f32 %v1225_v19, %v1208_v27  ;;  %v1210_v27 = vmul.f32 %v2997_v26, %v1194_v0 }
 0x49e   : > { %1226 = vadd.xlane.f32.xlu0 %v2862_v16 }
 0x49f   : > { %1273 = vst.msk [vmem:[#allocation4] sm:$0xff] %vm1272_vm4, %v1256_v55  ;;  %v1440_v12 = vpop.f32.mrf.mxu3 }
 0x4a4   : > { %v1235_v30 = vpop.xlane.xlu1 %1234 }
 0x4a5   : > { %v1261_v17 = vadd.f32 %v1235_v30, %v1213_v10  ;;  %v1300_v10 = vld [vmem:[#allocation5 + $0x58] sm:$0xff]  ;;  %v1198_v30 = vld [vmem:[#allocation4 + $0x30] sm:$0xff] }
 0x4a6   : > { %1238 = vadd.xlane.f32.xlu0 %v2899_v6  ;;  %v1137_v32 = vpop.permute.xlu0 %1136  ;;  %v1200_v6 = vld [vmem:[#allocation4 + $0x40] sm:$0xff] }
 0x4a7   : > { %1278 = vst.msk [vmem:[#allocation4 + $0x28] sm:$0xff] %vm1272_vm4, %v1261_v17  ;;  %v1158_v47 = vsub.f32 %v2873_v29, %v1137_v32  ;;  %v1216_v29 = vmul.f32 %v2942_v22, %v1200_v6  ;;  %v1396_v17 = vmul.f32 %v1363_v50, %v1300_v10 }
 0x4a9   : > { %v1188_v41 = vmul.f32 1.442695, %v1158_v47  ;;  %v1214_v47 = vmul.f32 %v3011_v53, %v1198_v30  ;;  %v1302_v53 = vld [vmem:[#allocation5 + $0x68] sm:$0xff] }
 0x4ab   : > { %2256 = vpow2.f32 %v1188_v41 }
 0x4ac   : > { %v1231_v16 = vpop.xlane.xlu1 %1230 }
 0x4ad   : > { %v1259_v57 = vadd.f32 %v1231_v16, %v1211_v20  ;;  %v1201_v16 = vld [vmem:[#allocation4 + $0x48] sm:$0xff] }
 0x4ae   : > { %1244 = vadd.xlane.f32.xlu0 %v3013_v36  ;;  %v1142_v3 = vpop.permute.xlu0 %1141 }
 0x4af   : > { %1276 = vst.msk [vmem:[#allocation4 + $0x18] sm:$0xff] %vm1272_vm4, %v1259_v57  ;;  %v1159_v42 = vsub.f32 %v2880_v45, %v1142_v3 }
 0x4b1   : > { %v2257_v40 = vpop.eup %2256  ;;  %v1190_v54 = vmul.f32 1.442695, %v1159_v42  ;;  %v1217_v42 = vmul.f32 %v3027_v4, %v1201_v16 }
 0x4b2   : > { %1252 = vadd.xlane.f32.xlu1 %v2257_v40 }
 0x4b3   : > { %2258 = vpow2.f32 %v1190_v54 }
 0x4b4   : > { %v1241_v31 = vpop.xlane.xlu1 %1240 }
 0x4b5   : > { %v1264_v24 = vadd.f32 %v1241_v31, %v1216_v29  ;;  %v1204_v29 = vld [vmem:[#allocation4 + $0x60] sm:$0xff]  ;;  %v1398_v31 = vmul.f32 %v3047_v28, %v1302_v53 }
 0x4b6   : > { %1250 = vadd.xlane.f32.xlu0 %v2249_v63  ;;  %v1318_v59 = vpop.permute.xlu0 %1317 }
 0x4b7   : > { %1281 = vst.msk [vmem:[#allocation4 + $0x40] sm:$0xff] %vm1272_vm4, %v1264_v24  ;;  %v1387_v36 = vmul.f32 %v1318_v59, %v1291_v8  ;;  %v1220_v24 = vmul.f32 %v3035_v23, %v1204_v29 }
 0x4b9   : > { %v2259_v62 = vpop.eup %2258  ;;  %v1460_v14 = vadd.f32 %v2973_v34, %v1387_v36 }
 0x4ba   : > { %1254 = vadd.xlane.f32.xlu2 %v2259_v62  ;;  %v1408_v45 = vpack.c.bf16 %v2259_v62, %v2257_v40 }
 0x4bb   : > { %1476 = vst.msk [vmem:[#allocation5 + $0x10] sm:$0xff] %vm628_vm3, %v1460_v14  ;;  %v1196_v14 = vld [vmem:[#allocation4 + $0x20] sm:$0xff] }
 0x4bc   : > { %1452 = vmatmul.bf16.gmra.mxu3 %v1408_v45  ;;  %v1212_v45 = vmul.f32 %v2937_v11, %v1196_v14 }
 0x4be   : > { %v1323_v5 = vpop.permute.xlu0 %1322 }
 0x4bf   : > { %v1388_v44 = vmul.f32 %v1323_v5, %v1292_v35 }
 0x4c1   : > { %v1461_v22 = vadd.f32 %v2976_v15, %v1388_v44  ;;  %v1193_v44 = vld [vmem:[#allocation4 + $0x8] sm:$0xff] }
 0x4c2   : > { %v1209_v28 = vmul.f32 %v2917_v37, %v1193_v44 }
 0x4c3   : > { %1477 = vst.msk [vmem:[#allocation5 + $0x18] sm:$0xff] %vm628_vm3, %v1461_v22 }
 0x4c6   : > { %v1338_v61 = vpop.permute.xlu0 %1337 }
 0x4c7   : > { %v1391_v63 = vmul.f32 %v1338_v61, %v1295_v13  ;;  %v1199_v13 = vld [vmem:[#allocation4 + $0x38] sm:$0xff] }
 0x4c8   : > { %v1247_v18 = vpop.xlane.xlu1 %1246  ;;  %v1215_v58 = vmul.f32 %v2945_v49, %v1199_v13 }
 0x4c9   : > { %v1464_v34 = vadd.f32 %v3025_v38, %v1391_v63  ;;  %v1267_v46 = vadd.f32 %v1247_v18, %v1219_v51  ;;  %v1202_v51 = vld [vmem:[#allocation4 + $0x50] sm:$0xff] }
 0x4ca   : > { %v1218_v11 = vmul.f32 %v2951_v43, %v1202_v51 }
 0x4cb   : > { %1480 = vst.msk [vmem:[#allocation5 + $0x30] sm:$0xff] %vm628_vm3, %v1464_v34  ;;  %v1206_v34 = vld [vmem:[#allocation4 + $0x70] sm:$0xff] }
 0x4cc   : > { %1284 = vst.msk [vmem:[#allocation4 + $0x58] sm:$0xff] %vm1272_vm4, %v1267_v46  ;;  %v1222_v37 = vmul.f32 %v2990_v21, %v1206_v34 }
 0x4ce   : > { %v1353_v7 = vpop.permute.xlu0 %1352 }
 0x4cf   : > { %v1394_v15 = vmul.f32 %v1353_v7, %v1298_v33  ;;  %v1205_v33 = vld [vmem:[#allocation4 + $0x68] sm:$0xff] }
 0x4d0   : > { %v1221_v49 = vmul.f32 %v2954_v48, %v1205_v33 }
 0x4d1   : > { %v1467_v2 = vadd.f32 %v1440_v12, %v1394_v15  ;;  %v1207_v12 = vld [vmem:[#allocation4 + $0x78] sm:$0xff] }
 0x4d2   : > { %v1223_v43 = vmul.f32 %v3040_v1, %v1207_v12 }
 0x4d3   : > { %1483 = vst.msk [vmem:[#allocation5 + $0x48] sm:$0xff] %vm628_vm3, %v1467_v2 }
 0x4d6   : > { %v1368_v26 = vpop.permute.xlu0 %1367 }
 0x4d7   : > { %v1397_v57 = vmul.f32 %v1368_v26, %v1301_v25 }
 0x4da   : > { %v1443_v38 = vpop.f32.mrf.mxu3 }
 0x4db   : > { %v1468_v19 = vadd.f32 %v1443_v38, %v1395_v39  ;;  %v1229_v55 = vpop.xlane.xlu2 %1228  ;;  %v1303_v39 = vld [vmem:[#allocation5 + $0x70] sm:$0xff] }
 0x4dc   : > { %v1258_v52 = vadd.f32 %v1229_v55, %v1210_v27  ;;  %v1399_v21 = vmul.f32 %v3072_v9, %v1303_v39 }
 0x4dd   : > { %1484 = vst.msk [vmem:[#allocation5 + $0x50] sm:$0xff] %vm628_vm3, %v1468_v19  ;;  %v1304_v19 = vld [vmem:[#allocation5 + $0x78] sm:$0xff] }
 0x4de   : > { %1275 = vst.msk [vmem:[#allocation4 + $0x10] sm:$0xff] %vm1272_vm4, %v1258_v52  ;;  %v1383_v4 = vpop.permute.xlu0 %1382 }
 0x4df   : > { %v1400_v48 = vmul.f32 %v1383_v4, %v1304_v19 }
 0x4e2   : > { %v1445_v32 = vpop.f32.mrf.mxu3 }
 0x4e3   : > { %v1469_v56 = vadd.f32 %v1445_v32, %v1396_v17  ;;  %v1237_v41 = vpop.xlane.xlu2 %1236 }
 0x4e4   : > { %v1262_v20 = vadd.f32 %v1237_v41, %v1214_v47 }
 0x4e5   : > { %1485 = vst.msk [vmem:[#allocation5 + $0x58] sm:$0xff] %vm628_vm3, %v1469_v56 }
 0x4e6   : > { %1279 = vst.msk [vmem:[#allocation4 + $0x30] sm:$0xff] %vm1272_vm4, %v1262_v20 }
 0x4ea   : > { %v1448_v3 = vpop.f32.mrf.mxu3 }
 0x4eb   : > { %v1470_v6 = vadd.f32 %v1448_v3, %v1397_v57  ;;  %v1243_v40 = vpop.xlane.xlu2 %1242 }
 0x4ec   : > { %v1265_v54 = vadd.f32 %v1243_v40, %v1217_v42 }
 0x4ed   : > { %1486 = vst.msk [vmem:[#allocation5 + $0x60] sm:$0xff] %vm628_vm3, %v1470_v6 }
 0x4ee   : > { %1282 = vst.msk [vmem:[#allocation4 + $0x48] sm:$0xff] %vm1272_vm4, %v1265_v54 }
 0x4f2   : > { %v1450_v8 = vpop.f32.mrf.mxu3 }
 0x4f3   : > { %v1471_v59 = vadd.f32 %v1450_v8, %v1398_v31  ;;  %v1249_v36 = vpop.xlane.xlu2 %1248 }
 0x4f4   : > { %v1268_v62 = vadd.f32 %v1249_v36, %v1220_v24 }
 0x4f5   : > { %1487 = vst.msk [vmem:[#allocation5 + $0x68] sm:$0xff] %vm628_vm3, %v1471_v59 }
 0x4f6   : > { %1285 = vst.msk [vmem:[#allocation4 + $0x60] sm:$0xff] %vm1272_vm4, %v1268_v62 }
 0x509   : > { %v1233_v35 = vpop.xlane.xlu0 %1232 }
 0x50a   : > { %v1260_v5 = vadd.f32 %v1233_v35, %v1212_v45 }
 0x50c   : > { %1277 = vst.msk [vmem:[#allocation4 + $0x20] sm:$0xff] %vm1272_vm4, %v1260_v5 }
 0x511   : > { %v1227_v22 = vpop.xlane.xlu0 %1226 }
 0x512   : > { %v1257_v23 = vadd.f32 %v1227_v22, %v1209_v28 }
 0x514   : > { %1274 = vst.msk [vmem:[#allocation4 + $0x8] sm:$0xff] %vm1272_vm4, %v1257_v23 }
 0x519   : > { %v1239_v61 = vpop.xlane.xlu0 %1238 }
 0x51a   : > { %v1263_v63 = vadd.f32 %v1239_v61, %v1215_v58 }
 0x51c   : > { %1280 = vst.msk [vmem:[#allocation4 + $0x38] sm:$0xff] %vm1272_vm4, %v1263_v63 }
 0x521   : > { %v1245_v18 = vpop.xlane.xlu0 %1244 }
 0x522   : > { %v1266_v46 = vadd.f32 %v1245_v18, %v1218_v11 }
 0x524   : > { %1283 = vst.msk [vmem:[#allocation4 + $0x50] sm:$0xff] %vm1272_vm4, %v1266_v46 }
 0x525   : > { %v1253_v50 = vpop.xlane.xlu1 %1252 }
 0x526   : > { %v1270_v7 = vadd.f32 %v1253_v50, %v1222_v37 }
 0x528   : > { %1287 = vst.msk [vmem:[#allocation4 + $0x70] sm:$0xff] %vm1272_vm4, %v1270_v7 }
 0x529   : > { %v1251_v15 = vpop.xlane.xlu0 %1250 }
 0x52a   : > { %v1269_v2 = vadd.f32 %v1251_v15, %v1221_v49 }
 0x52c   : > { %1286 = vst.msk [vmem:[#allocation4 + $0x68] sm:$0xff] %vm1272_vm4, %v1269_v2 }
 0x52d   : > { %v1255_v60 = vpop.xlane.xlu2 %1254 }
 0x52e   : > { %v1271_v0 = vadd.f32 %v1255_v60, %v1223_v43 }
 0x530   : > { %1288 = vst.msk [vmem:[#allocation4 + $0x78] sm:$0xff] %vm1272_vm4, %v1271_v0 }
 0x53f   : > { %v1453_v38 = vpop.f32.mrf.mxu3 }
 0x540   : > { %v1472_v27 = vadd.f32 %v1453_v38, %v1399_v21 }
 0x542   : > { %1488 = vst.msk [vmem:[#allocation5 + $0x70] sm:$0xff] %vm628_vm3, %v1472_v27 }
 0x546   : > { %1509 = sbr.rel (%p2086_p11) target bundleno = 1543 (0x607), region = 48 }
 0x547   : > { %v1455_v55 = vpop.f32.mrf.mxu3 }
 0x548   : > { %v1473_v52 = vadd.f32 %v1455_v55, %v1400_v48 }
 0x54a   : > { %1489 = vst.msk [vmem:[#allocation5 + $0x78] sm:$0xff] %vm628_vm3, %v1473_v52 }
 0x54b   : > { %v1514_v1 = vld [vmem:[#allocation4 + $0x20] sm:$0xff]  ;;  %v1512_v10 = vld [vmem:[#allocation4 + $0x10] sm:$0xff]  ;;  %v2354_v17 = vmov 0   ;;  %v1515_v9 = vld [vmem:[#allocation4 + $0x28] sm:$0xff]  ;;  %vm1792_vm5 = vcmask 1040384   ;;  %vm1794_vm6 = vcmask 517120  }
 0x54c   : > { %v1510_v30 = vld [vmem:[#allocation4] sm:$0xff]  ;;  %2262 = vset.pattern.permute.xlu2 %v2354_v17  ;;  %2261 = vset.pattern.permute.xlu1 %v2354_v17  ;;  %2263 = vrcp.f32 %v1514_v1  ;;  %v1513_v32 = vld [vmem:[#allocation4 + $0x18] sm:$0xff]  ;;  %v1511_v47 = vld [vmem:[#allocation4 + $0x8] sm:$0xff] }
 0x54d   : > { %2260 = vset.pattern.permute.xlu0 %v2354_v17  ;;  %2265 = vrcp.f32 %v1512_v10  ;;  %v1518_v25 = vld [vmem:[#allocation4 + $0x40] sm:$0xff]  ;;  %v1517_v16 = vld [vmem:[#allocation4 + $0x38] sm:$0xff]  ;;  %v1516_v3 = vld [vmem:[#allocation4 + $0x30] sm:$0xff] }
 0x54e   : > { %2267 = vrcp.f32 %v1510_v30  ;;  %v1521_v6 = vld [vmem:[#allocation4 + $0x58] sm:$0xff]  ;;  %v1520_v54 = vld [vmem:[#allocation4 + $0x50] sm:$0xff]  ;;  %v1519_v29 = vld [vmem:[#allocation4 + $0x48] sm:$0xff] }
 0x54f   : > { %2269 = vrcp.f32 %v1515_v9  ;;  %v1524_v8 = vld [vmem:[#allocation4 + $0x70] sm:$0xff]  ;;  %v1523_v59 = vld [vmem:[#allocation4 + $0x68] sm:$0xff]  ;;  %v1522_v62 = vld [vmem:[#allocation4 + $0x60] sm:$0xff] }
 0x550   : > { %2271 = vrcp.f32 %v1513_v32  ;;  %v1525_v35 = vld [vmem:[#allocation4 + $0x78] sm:$0xff]  ;;  %v1562_v28 = vld [vmem:[#allocation5 + $0x20] sm:$0xff]  ;;  %v1563_v61 = vld [vmem:[#allocation5 + $0x28] sm:$0xff] }
 0x551   : > { %2273 = vrcp.f32 %v1511_v47  ;;  %v1546_v22 = vld [vmem:[%s2442_s15 + $0x20] sm:$0xff]  ;;  %v1547_v63 = vld [vmem:[%s2442_s15 + $0x28] sm:$0xff]  ;;  %v1569_v7 = vld [vmem:[#allocation5 + $0x58] sm:$0xff] }
 0x552   : > { %v2264_v56 = vpop.eup %2263  ;;  %2275 = vrcp.f32 %v1518_v25  ;;  %v1566_v34 = vld [vmem:[#allocation5 + $0x40] sm:$0xff]  ;;  %v1560_v49 = vld [vmem:[#allocation5 + $0x10] sm:$0xff]  ;;  %v1553_v15 = vld [vmem:[%s2442_s15 + $0x58] sm:$0xff] }
 0x553   : > { %v2266_v41 = vpop.eup %2265  ;;  %1596 = vperm.xlu2 %2262, %v2264_v56   ;;  %2277 = vrcp.f32 %v1517_v16  ;;  %v1550_v46 = vld [vmem:[%s2442_s15 + $0x40] sm:$0xff]  ;;  %v1544_v60 = vld [vmem:[%s2442_s15 + $0x10] sm:$0xff]  ;;  %v1561_v1 = vld [vmem:[#allocation5 + $0x18] sm:$0xff] }
 0x554   : > { %v2268_v20 = vpop.eup %2267  ;;  %1586 = vperm.xlu1 %2261, %v2266_v41   ;;  %2279 = vrcp.f32 %v1516_v3  ;;  %v1558_v2 = vld [vmem:[#allocation5] sm:$0xff]  ;;  %v1572_v52 = vld [vmem:[#allocation5 + $0x70] sm:$0xff]  ;;  %v1559_v17 = vld [vmem:[#allocation5 + $0x8] sm:$0xff] }
 0x555   : > { %1576 = vperm.xlu0 %2260, %v2268_v20   ;;  %v2270_v26 = vpop.eup %2269  ;;  %2281 = vrcp.f32 %v1521_v6  ;;  %v1542_v21 = vld [vmem:[%s2442_s15] sm:$0xff]  ;;  %v1556_v10 = vld [vmem:[%s2442_s15 + $0x70] sm:$0xff]  ;;  %v1545_v32 = vld [vmem:[%s2442_s15 + $0x18] sm:$0xff] }
 0x556   : > { %v2272_v57 = vpop.eup %2271  ;;  %2283 = vrcp.f32 %v1520_v54  ;;  %v1543_v41 = vld [vmem:[%s2442_s15 + $0x8] sm:$0xff] }
 0x557   : > { %v2274_v42 = vpop.eup %2273  ;;  %2285 = vrcp.f32 %v1519_v29 }
 0x558   : > { %v2276_v40 = vpop.eup %2275  ;;  %2287 = vrcp.f32 %v1524_v8 }
 0x559   : > { %v2278_v53 = vpop.eup %2277  ;;  %2289 = vrcp.f32 %v1523_v59 }
 0x55a   : > { %v2280_v31 = vpop.eup %2279  ;;  %2291 = vrcp.f32 %v1522_v62  ;;  %v1549_v62 = vld [vmem:[%s2442_s15 + $0x38] sm:$0xff] }
 0x55b   : > { %1601 = vperm.xlu2 %2262, %v2270_v26   ;;  %v2282_v24 = vpop.eup %2281  ;;  %2293 = vrcp.f32 %v1525_v35 }
 0x55c   : > { %1591 = vperm.xlu1 %2261, %v2272_v57   ;;  %v2284_v36 = vpop.eup %2283 }
 0x55d   : > { %1581 = vperm.xlu0 %2260, %v2274_v42   ;;  %v2286_v4 = vpop.eup %2285 }
 0x55e   : > { %v2288_v14 = vpop.eup %2287 }
 0x55f   : > { %v2290_v45 = vpop.eup %2289 }
 0x560   : > { %v2292_v5 = vpop.eup %2291 }
 0x561   : > { %v2294_v44 = vpop.eup %2293 }
 0x563   : > { %1616 = vperm.xlu2 %2262, %v2276_v40  }
 0x564   : > { %1611 = vperm.xlu1 %2261, %v2278_v53   ;;  %v1565_v53 = vld [vmem:[#allocation5 + $0x38] sm:$0xff] }
 0x565   : > { %1606 = vperm.xlu0 %2260, %v2280_v31   ;;  %v1564_v31 = vld [vmem:[#allocation5 + $0x30] sm:$0xff] }
 0x56b   : > { %1631 = vperm.xlu2 %2262, %v2282_v24  }
 0x56c   : > { %1626 = vperm.xlu1 %2261, %v2284_v36  }
 0x56d   : > { %1621 = vperm.xlu0 %2260, %v2286_v4  }
 0x573   : > { %1646 = vperm.xlu2 %2262, %v2288_v14  }
 0x574   : > { %1641 = vperm.xlu1 %2261, %v2290_v45  }
 0x575   : > { %1636 = vperm.xlu0 %2260, %v2292_v5   ;;  %v1548_v5 = vld [vmem:[%s2442_s15 + $0x30] sm:$0xff] }
 0x57d   : > { %1651 = vperm.xlu0 %2260, %v2294_v44  }
 0x5ad   : > { %v1597_v23 = vpop.permute.xlu2 %1596 }
 0x5ae   : > { %v1658_v13 = vmul.f32 %v1597_v23, %v1562_v28 }
 0x5b0   : > { %v3108_v58 = vadd.f32 %v1658_v13, %v1546_v22 }
 0x5b2   : > { %1690 = vst.msk [vmem:[%s2447_s18 + $0x20] sm:$0xff] %vm628_vm3, %v3108_v58  ;;  %v1743_v28 = vmul.f32 %v3108_v58, %v3108_v58 }
 0x5b5   : > { %v1602_v51 = vpop.permute.xlu2 %1601 }
 0x5b6   : > { %v1659_v11 = vmul.f32 %v1602_v51, %v1563_v61 }
 0x5b8   : > { %v3114_v18 = vadd.f32 %v1659_v11, %v1547_v63  ;;  %v1709_v11 = vsel %vm628_vm3, %v3108_v58, 0.0 }
 0x5ba   : > { %1691 = vst.msk [vmem:[%s2447_s18 + $0x28] sm:$0xff] %vm628_vm3, %v3114_v18 }
 0x5bd   : > { %v1617_v37 = vpop.permute.xlu2 %1616 }
 0x5be   : > { %v1662_v50 = vmul.f32 %v1617_v37, %v1566_v34  ;;  %v1744_v34 = vmul.f32 %v3114_v18, %v3114_v18 }
 0x5c0   : > { %v3120_v33 = vadd.f32 %v1662_v50, %v1550_v46 }
 0x5c2   : > { %1694 = vst.msk [vmem:[%s2447_s18 + $0x40] sm:$0xff] %vm628_vm3, %v3120_v33 }
 0x5c5   : > { %v1632_v12 = vpop.permute.xlu2 %1631 }
 0x5c6   : > { %v1665_v43 = vmul.f32 %v1632_v12, %v1569_v7  ;;  %v1587_v0 = vpop.permute.xlu1 %1586  ;;  %v1568_v12 = vld [vmem:[#allocation5 + $0x50] sm:$0xff] }
 0x5c7   : > { %v1656_v39 = vmul.f32 %v1587_v0, %v1560_v49  ;;  %v1577_v38 = vpop.permute.xlu0 %1576  ;;  %v1762_v49 = vsel %vm628_vm3, %v1743_v28, 0.0  ;;  %v1764_v0 = vsel %vm628_vm3, %v1744_v34, 0.0 }
 0x5c8   : > { %v3128_v27 = vadd.f32 %v1665_v43, %v1553_v15  ;;  %v1654_v19 = vmul.f32 %v1577_v38, %v1558_v2  ;;  %v1711_v15 = vsel %vm628_vm3, %v3114_v18, 0.0  ;;  %v1552_v38 = vld [vmem:[%s2442_s15 + $0x50] sm:$0xff] }
 0x5c9   : > { %v1672_v48 = vadd.f32 %v1656_v39, %v1544_v60  ;;  %v1567_v60 = vld [vmem:[#allocation5 + $0x48] sm:$0xff] }
 0x5ca   : > { %1697 = vst.msk [vmem:[%s2447_s18 + $0x58] sm:$0xff] %vm628_vm3, %v3128_v27  ;;  %v1670_v55 = vadd.f32 %v1654_v19, %v1542_v21 }
 0x5cb   : > { %1688 = vst.msk [vmem:[%s2447_s18 + $0x10] sm:$0xff] %vm628_vm3, %v1672_v48  ;;  %v1741_v42 = vmul.f32 %v1672_v48, %v1672_v48  ;;  %v1705_v8 = vsel %vm628_vm3, %v1672_v48, 0.0 }
 0x5cc   : > { %1686 = vst.msk [vmem:[%s2447_s18] sm:$0xff] %vm628_vm3, %v1670_v55  ;;  %v1739_v57 = vmul.f32 %v1670_v55, %v1670_v55  ;;  %v1702_v6 = vsel %vm628_vm3, %v1670_v55, 0.0 }
 0x5cd   : > { %v1647_v30 = vpop.permute.xlu2 %1646  ;;  %v1758_v22 = vsel %vm628_vm3, %v1741_v42, 0.0 }
 0x5ce   : > { %v1668_v9 = vmul.f32 %v1647_v30, %v1572_v52  ;;  %v1592_v47 = vpop.permute.xlu1 %1591  ;;  %v1755_v24 = vsel %vm628_vm3, %v1739_v57, 0.0 }
 0x5cf   : > { %v1657_v56 = vmul.f32 %v1592_v47, %v1561_v1  ;;  %v1582_v20 = vpop.permute.xlu0 %1581  ;;  %v1551_v1 = vld [vmem:[%s2442_s15 + $0x48] sm:$0xff] }
 0x5d0   : > { %v3140_v25 = vadd.f32 %v1668_v9, %v1556_v10  ;;  %v1655_v26 = vmul.f32 %v1582_v20, %v1559_v17  ;;  %v1747_v10 = vmul.f32 %v3120_v33, %v3120_v33 }
 0x5d1   : > { %v1673_v16 = vadd.f32 %v1657_v56, %v1545_v32 }
 0x5d2   : > { %1700 = vst.msk [vmem:[%s2447_s18 + $0x70] sm:$0xff] %vm628_vm3, %v3140_v25  ;;  %v1671_v3 = vadd.f32 %v1655_v26, %v1543_v41  ;;  %v1717_v41 = vsel %vm628_vm3, %v3120_v33, 0.0 }
 0x5d3   : > { %1689 = vst.msk [vmem:[%s2447_s18 + $0x18] sm:$0xff] %vm628_vm3, %v1673_v16  ;;  %v1742_v59 = vmul.f32 %v1673_v16, %v1673_v16  ;;  %v1707_v23 = vsel %vm628_vm3, %v1673_v16, 0.0 }
 0x5d4   : > { %1687 = vst.msk [vmem:[%s2447_s18 + $0x8] sm:$0xff] %vm628_vm3, %v1671_v3  ;;  %v1703_v40 = vsel %vm628_vm3, %v1671_v3, 0.0  ;;  %v1740_v54 = vmul.f32 %v1671_v3, %v1671_v3  ;;  %v1770_v3 = vsel %vm628_vm3, %v1747_v10, 0.0 }
 0x5d5   : > { %v1704_v29 = vadd.f32 %v1703_v40, %v1702_v6  ;;  %v1760_v46 = vsel %vm628_vm3, %v1742_v59, 0.0 }
 0x5d6   : > { %v1756_v36 = vsel %vm628_vm3, %v1740_v54, 0.0  ;;  %v1612_v4 = vpop.permute.xlu1 %1611  ;;  %v1571_v54 = vld [vmem:[#allocation5 + $0x68] sm:$0xff] }
 0x5d7   : > { %v1706_v14 = vadd.f32 %v1705_v8, %v1704_v29  ;;  %v1757_v45 = vadd.f32 %v1756_v36, %v1755_v24  ;;  %v1661_v35 = vmul.f32 %v1612_v4, %v1565_v53  ;;  %v1607_v44 = vpop.permute.xlu0 %1606  ;;  %v1570_v29 = vld [vmem:[#allocation5 + $0x60] sm:$0xff]  ;;  %v1555_v24 = vld [vmem:[%s2442_s15 + $0x68] sm:$0xff] }
 0x5d8   : > { %v1660_v13 = vmul.f32 %v1607_v44, %v1564_v31 }
 0x5d9   : > { %v1708_v61 = vadd.f32 %v1707_v23, %v1706_v14  ;;  %v1759_v63 = vadd.f32 %v1758_v22, %v1757_v45  ;;  %v1677_v51 = vadd.f32 %v1661_v35, %v1549_v62  ;;  %v1554_v14 = vld [vmem:[%s2442_s15 + $0x60] sm:$0xff]  ;;  %v1750_v35 = vmul.f32 %v3128_v27, %v3128_v27 }
 0x5da   : > { %v1676_v37 = vadd.f32 %v1660_v13, %v1548_v5  ;;  %v1723_v23 = vsel %vm628_vm3, %v3128_v27, 0.0 }
 0x5db   : > { %v1761_v50 = vadd.f32 %v1760_v46, %v1759_v63  ;;  %1693 = vst.msk [vmem:[%s2447_s18 + $0x38] sm:$0xff] %vm628_vm3, %v1677_v51  ;;  %v1710_v7 = vadd.f32 %v1709_v11, %v1708_v61  ;;  %v1746_v39 = vmul.f32 %v1677_v51, %v1677_v51  ;;  %v1715_v30 = vsel %vm628_vm3, %v1677_v51, 0.0 }
 0x5dc   : > { %1692 = vst.msk [vmem:[%s2447_s18 + $0x30] sm:$0xff] %vm628_vm3, %v1676_v37  ;;  %v1745_v58 = vmul.f32 %v1676_v37, %v1676_v37  ;;  %v1713_v21 = vsel %vm628_vm3, %v1676_v37, 0.0  ;;  %v1776_v63 = vsel %vm628_vm3, %v1750_v35, 0.0 }
 0x5dd   : > { %v1712_v2 = vadd.f32 %v1711_v15, %v1710_v7  ;;  %v1763_v43 = vadd.f32 %v1762_v49, %v1761_v50  ;;  %v1768_v20 = vsel %vm628_vm3, %v1746_v39, 0.0  ;;  %v1573_v50 = vld [vmem:[#allocation5 + $0x78] sm:$0xff]  ;;  %v1729_v39 = vsel %vm628_vm3, %v3140_v25, 0.0 }
 0x5de   : > { %v1627_v19 = vpop.permute.xlu1 %1626  ;;  %v1766_v17 = vsel %vm628_vm3, %v1745_v58, 0.0  ;;  %v1557_v58 = vld [vmem:[%s2442_s15 + $0x78] sm:$0xff] }
 0x5df   : > { %v1765_v48 = vadd.f32 %v1764_v0, %v1763_v43  ;;  %v1714_v55 = vadd.f32 %v1713_v21, %v1712_v2  ;;  %v1664_v52 = vmul.f32 %v1627_v19, %v1568_v12  ;;  %v1622_v18 = vpop.permute.xlu0 %1621  ;;  %v1753_v2 = vmul.f32 %v3140_v25, %v3140_v25 }
 0x5e0   : > { %v1663_v9 = vmul.f32 %v1622_v18, %v1567_v60 }
 0x5e1   : > { %v1716_v32 = vadd.f32 %v1715_v30, %v1714_v55  ;;  %v1767_v47 = vadd.f32 %v1766_v17, %v1765_v48  ;;  %v1680_v56 = vadd.f32 %v1664_v52, %v1552_v38  ;;  %v1782_v19 = vsel %vm628_vm3, %v1753_v2, 0.0 }
 0x5e2   : > { %v1679_v26 = vadd.f32 %v1663_v9, %v1551_v1 }
 0x5e3   : > { %v1769_v16 = vadd.f32 %v1768_v20, %v1767_v47  ;;  %1696 = vst.msk [vmem:[%s2447_s18 + $0x50] sm:$0xff] %vm628_vm3, %v1680_v56  ;;  %v1718_v57 = vadd.f32 %v1717_v41, %v1716_v32  ;;  %v1749_v42 = vmul.f32 %v1680_v56, %v1680_v56  ;;  %v1721_v31 = vsel %vm628_vm3, %v1680_v56, 0.0 }
 0x5e4   : > { %1695 = vst.msk [vmem:[%s2447_s18 + $0x48] sm:$0xff] %vm628_vm3, %v1679_v26  ;;  %v1719_v6 = vsel %vm628_vm3, %v1679_v26, 0.0  ;;  %v1748_v40 = vmul.f32 %v1679_v26, %v1679_v26 }
 0x5e5   : > { %v1771_v53 = vadd.f32 %v1770_v3, %v1769_v16  ;;  %v1720_v33 = vadd.f32 %v1719_v6, %v1718_v57  ;;  %v1774_v5 = vsel %vm628_vm3, %v1749_v42, 0.0 }
 0x5e6   : > { %v1772_v8 = vsel %vm628_vm3, %v1748_v40, 0.0  ;;  %v1642_v59 = vpop.permute.xlu1 %1641 }
 0x5e7   : > { %v1722_v36 = vadd.f32 %v1721_v31, %v1720_v33  ;;  %v1773_v62 = vadd.f32 %v1772_v8, %v1771_v53  ;;  %v1667_v4 = vmul.f32 %v1642_v59, %v1571_v54  ;;  %v1637_v45 = vpop.permute.xlu0 %1636 }
 0x5e8   : > { %v1666_v44 = vmul.f32 %v1637_v45, %v1570_v29 }
 0x5e9   : > { %v1775_v28 = vadd.f32 %v1774_v5, %v1773_v62  ;;  %v1683_v22 = vadd.f32 %v1667_v4, %v1555_v24  ;;  %v1724_v61 = vadd.f32 %v1723_v23, %v1722_v36 }
 0x5ea   : > { %v1682_v13 = vadd.f32 %v1666_v44, %v1554_v14 }
 0x5eb   : > { %1699 = vst.msk [vmem:[%s2447_s18 + $0x68] sm:$0xff] %vm628_vm3, %v1683_v22  ;;  %v1752_v51 = vmul.f32 %v1683_v22, %v1683_v22  ;;  %v1777_v46 = vadd.f32 %v1776_v63, %v1775_v28  ;;  %v1727_v7 = vsel %vm628_vm3, %v1683_v22, 0.0 }
 0x5ec   : > { %1698 = vst.msk [vmem:[%s2447_s18 + $0x60] sm:$0xff] %vm628_vm3, %v1682_v13  ;;  %v1725_v11 = vsel %vm628_vm3, %v1682_v13, 0.0  ;;  %v1751_v34 = vmul.f32 %v1682_v13, %v1682_v13 }
 0x5ed   : > { %v1726_v37 = vadd.f32 %v1725_v11, %v1724_v61  ;;  %v1780_v43 = vsel %vm628_vm3, %v1752_v51, 0.0 }
 0x5ee   : > { %v1778_v27 = vsel %vm628_vm3, %v1751_v34, 0.0 }
 0x5ef   : > { %v1728_v49 = vadd.f32 %v1727_v7, %v1726_v37  ;;  %v1779_v15 = vadd.f32 %v1778_v27, %v1777_v46  ;;  %v1652_v12 = vpop.permute.xlu0 %1651 }
 0x5f0   : > { %v1669_v60 = vmul.f32 %v1652_v12, %v1573_v50 }
 0x5f1   : > { %v1781_v0 = vadd.f32 %v1780_v43, %v1779_v15  ;;  %v1730_v38 = vadd.f32 %v1729_v39, %v1728_v49 }
 0x5f2   : > { %v1685_v21 = vadd.f32 %v1669_v60, %v1557_v58 }
 0x5f3   : > { %v1783_v52 = vadd.f32 %v1782_v19, %v1781_v0 }
 0x5f4   : > { %1701 = vst.msk [vmem:[%s2447_s18 + $0x78] sm:$0xff] %vm628_vm3, %v1685_v21  ;;  %v1731_v48 = vsel %vm628_vm3, %v1685_v21, 0.0  ;;  %v1754_v55 = vmul.f32 %v1685_v21, %v1685_v21 }
 0x5f5   : > { %v1732_v1 = vadd.f32 %v1731_v48, %v1730_v38 }
 0x5f6   : > { %v1784_v18 = vsel %vm628_vm3, %v1754_v55, 0.0 }
 0x5f7   : > { %v1733_v10 = vrot.slane %v1732_v1, 4  ;;  %v1785_v30 = vadd.f32 %v1784_v18, %v1783_v52 }
 0x5f9   : > { %v1734_v17 = vadd.f32 %v1733_v10, %v1732_v1  ;;  %v1786_v9 = vrot.slane %v1785_v30, 4 }
 0x5fb   : > { %v1735_v32 = vrot.slane %v1734_v17, 2  ;;  %v1787_v25 = vadd.f32 %v1786_v9, %v1785_v30 }
 0x5fd   : > { %v1736_v47 = vadd.f32 %v1735_v32, %v1734_v17  ;;  %v1788_v56 = vrot.slane %v1787_v25, 2 }
 0x5ff   : > { %v1737_v41 = vrot.slane %v1736_v47, 1  ;;  %v1789_v20 = vadd.f32 %v1788_v56, %v1787_v25 }
 0x601   : > { %v1790_v26 = vrot.slane %v1789_v20, 1  ;;  %v1738_v16 = vadd.f32 %v1737_v41, %v1736_v47 }
 0x603   : > { %v1791_v57 = vadd.f32 %v1790_v26, %v1789_v20 }
 0x605   : > { %v1793_v3 = vsel %vm1792_vm5, %v1738_v16, %v1791_v57 }
 0x606   : > { %1795 = vst.msk [vmem:[%s2458_s14] sm:$0x3] %vm1794_vm6, %v1793_v3 }
 0x607 PF: > { %s17_s27 = sadd.s32 1, %s2349_s27   ;;  %s3257_s15 = sld [smem:[#allocation6_spill]] }
 0x608   : > { %p14_p12 = scmp.ge.s32.totalorder %s17_s27, 10   ;;  %s3258_s18 = sld [smem:[#allocation7_spill]] }
 0x609   : > { %s3259_s12 = sld [smem:[#allocation8_spill]]  ;;  %s3260_s21 = smov %s2337_s24 }
 0x60a   : > { %s3261_s22 = smov %s2341_s25  ;;  %s3262_s23 = smov %s2345_s26 }
 0x60b   :  { %16 = sbr.rel (!%p14_p12) target bundleno = 4 (0x4), region = 93 }
 0x60d   : > { %s3263_s24 = smov %s3257_s15 }
 0x60e   : > { %s3264_s25 = smov %s3258_s18 }
 0x60f   : > { %s3265_s26 = smov %s3259_s12 }

</bundles_post_ra>
